<compile_context>
chip_gen: v7x
topology: tpu7x:2x2x1
jax: 0.10.0
libtpu: 0.0.40
codegen_flags: <defaults>
</compile_context>

<pallas_src>
import functools

import jax
import jax.numpy as jnp
import numpy as np
from jax.experimental import pallas as pl
from jax.experimental.pallas import tpu as pltpu

LANE = 128


def _two_tower_kernel(num_layers, idx_ref, len_ref, table_ref, *refs):
    """One grid step == one tower: embedding-bag sum pooling + MLP (Linear -> ReLU)."""
    w_refs = refs[:num_layers]
    b_refs = refs[num_layers:2 * num_layers]
    out_ref = refs[2 * num_layers]

    t = pl.program_id(0)                 # tower id: 0 = query, 1 = candidate
    V, D = table_ref.shape
    B = len_ref.shape[1]
    L = idx_ref.shape[1] // B

    # --- Embedding-bag sum pooling: direct row gather + length mask (no one-hot, no pool matmul)
    rows = []
    for b in range(B):                   # B, L are small & static: full unroll
        length = len_ref[t, b]           # SMEM scalar read
        acc = jnp.zeros((1, D), jnp.float32)
        for l in range(L):
            raw = idx_ref[t, b * L + l]                 # SMEM scalar read
            safe = jnp.clip(raw, 0, V - 1)              # clamp padded / garbage indices
            row = table_ref[pl.ds(safe, 1), :]          # [1, D] dynamic row load (VMEM)
            mask = (l < length).astype(jnp.float32)     # scalar 0/1 validity
            acc = acc + row * mask
        rows.append(acc)
    h = jnp.concatenate(rows, axis=0)                   # [B, D] pooled embeddings

    # --- MLP: each layer is Linear (x @ W + b) followed by ReLU; widths pre-padded to 128 lanes
    for li in range(num_layers):
        h = jnp.dot(h, w_refs[li][...], preferred_element_type=jnp.float32)
        h = jnp.maximum(h + b_refs[li][...], 0.0)

    out_ref[...] = h                                    # lane-dense [B, OUT_PAD] store


def _pad_mlp(weights, biases, lane=LANE):
    """Zero-pad each layer's output width to a multiple of 128 (padded cols stay exactly 0)."""
    padded_w, padded_b = [], []
    prev_pad = weights[0].shape[0]
    for w, b in zip(weights, biases):
        in_dim, out_dim = w.shape
        out_pad = ((out_dim + lane - 1) // lane) * lane
        wp = jnp.zeros((prev_pad, out_pad), w.dtype).at[:in_dim, :out_dim].set(w)
        bp = jnp.zeros((1, out_pad), b.dtype).at[:, :out_dim].set(b)
        padded_w.append(wp)
        padded_b.append(bp)
        prev_pad = out_pad
    return padded_w, padded_b


def two_tower_forward(query_idx, query_len, cand_idx, cand_len, params):
    """TwoTower.forward: returns (query_embedding, candidate_embedding)."""
    B, L = query_idx.shape
    V, D = params["query_table"].shape
    num_layers = len(params["query_w"])
    out_dim = params["query_w"][-1].shape[1]
    out_pad = ((out_dim + LANE - 1) // LANE) * LANE

    # Stack the two (independent) towers along a leading axis -> one fused kernel, grid=(2,).
    idx = jnp.stack([query_idx.reshape(-1), cand_idx.reshape(-1)]).astype(jnp.int32)    # [2, B*L]
    lens = jnp.stack([query_len.reshape(-1), cand_len.reshape(-1)]).astype(jnp.int32)   # [2, B]
    tables = jnp.stack([params["query_table"], params["cand_table"]])                   # [2, V, D]

    qw, qb = _pad_mlp(params["query_w"], params["query_b"])
    cw, cb = _pad_mlp(params["cand_w"], params["cand_b"])
    w_stacked = [jnp.stack([qw[i], cw[i]]) for i in range(num_layers)]   # [2, in_pad, out_pad]
    b_stacked = [jnp.stack([qb[i], cb[i]]) for i in range(num_layers)]   # [2, 1, out_pad]

    def _imap(t, idx_ref, len_ref):      # scalar-prefetch refs arrive positionally
        return (t, 0, 0)

    in_specs = [pl.BlockSpec((None, V, D), _imap)]
    in_specs += [pl.BlockSpec((None,) + w.shape[1:], _imap) for w in w_stacked]
    in_specs += [pl.BlockSpec((None,) + b.shape[1:], _imap) for b in b_stacked]

    grid_spec = pltpu.PrefetchScalarGridSpec(
        num_scalar_prefetch=2,           # idx, lens -> SMEM
        grid=(2,),
        in_specs=in_specs,
        out_specs=pl.BlockSpec((None, B, out_pad), _imap),
    )

    out = pl.pallas_call(
        functools.partial(_two_tower_kernel, num_layers),
        out_shape=jax.ShapeDtypeStruct((2, B, out_pad), jnp.float32),
        grid_spec=grid_spec,
        compiler_params=pltpu.CompilerParams(
            dimension_semantics=("parallel",)),          # towers are independent (2 TCs on v7x)
    )(idx, lens, tables, *w_stacked, *b_stacked)

    return out[0, :, :out_dim], out[1, :, :out_dim]


def _ref_tower(indices, lengths, table, weights, biases):
    """Pure-JAX reference for correctness checking."""
    emb = table[indices]                                        # [B, L, D]
    pos = jnp.arange(indices.shape[1])[None, :]
    mask = (pos < lengths).astype(jnp.float32)[..., None]
    h = jnp.sum(emb * mask, axis=1)                             # [B, D]
    for w, b in zip(weights, biases):
        h = jnp.maximum(h @ w + b, 0.0)
    return h


if __name__ == "__main__":
    # Small, TwoTower-consistent shapes.
    B = 8            # batch
    L = 4            # max jagged indices per sample (padded)
    V = 64           # num_embeddings per table
    D = 32           # embedding_dim (shared by both bags, per the assert)
    layer_sizes = [32, 16]   # MLP layer sizes for both towers

    key = jax.random.PRNGKey(0)
    keys = jax.random.split(key, 12)

    # Jagged inputs (KeyedJaggedTensor surrogate): padded indices + lengths.
    query_idx = jax.random.randint(keys[0], (B, L), 0, V, dtype=jnp.int32)
    query_len = jax.random.randint(keys[1], (B, 1), 1, L + 1, dtype=jnp.int32)
    cand_idx = jax.random.randint(keys[2], (B, L), 0, V, dtype=jnp.int32)
    cand_len = jax.random.randint(keys[3], (B, 1), 1, L + 1, dtype=jnp.int32)

    # Deterministic parameter init (synthetic; no checkpoint loading).
    def mlp_params(k, in_size, sizes):
        ws, bs = [], []
        prev = in_size
        for s in sizes:
            kw, kb, k = jax.random.split(k, 3)
            ws.append(jax.random.normal(kw, (prev, s), jnp.float32) * 0.1)
            bs.append(jax.random.normal(kb, (1, s), jnp.float32) * 0.1)
            prev = s
        return ws, bs

    qw, qb = mlp_params(keys[4], D, layer_sizes)
    cw, cb = mlp_params(keys[5], D, layer_sizes)
    params = {
        "query_table": jax.random.normal(keys[6], (V, D), jnp.float32) * 0.1,
        "cand_table": jax.random.normal(keys[7], (V, D), jnp.float32) * 0.1,
        "query_w": qw, "query_b": qb,
        "cand_w": cw, "cand_b": cb,
    }

    q_emb, c_emb = two_tower_forward(query_idx, query_len, cand_idx, cand_len, params)
    jax.block_until_ready((q_emb, c_emb))

    q_ref = _ref_tower(query_idx, query_len, params["query_table"],
                       params["query_w"], params["query_b"])
    c_ref = _ref_tower(cand_idx, cand_len, params["cand_table"],
                       params["cand_w"], params["cand_b"])

    np.testing.assert_allclose(np.asarray(q_emb), np.asarray(q_ref), rtol=1e-5, atol=1e-5)
    np.testing.assert_allclose(np.asarray(c_emb), np.asarray(c_ref), rtol=1e-5, atol=1e-5)
    print("KERNEL_OK")
</pallas_src>

<mosaic_0001>
module attributes {stable_mosaic.version = 11 : i64} {
  func.func @_two_tower_kernel(%arg0: i32, %arg1: memref<2x32xi32, #tpu.memory_space<smem>>, %arg2: memref<2x8xi32, #tpu.memory_space<smem>>, %arg3: memref<1x64x32xf32, #tpu.memory_space<vmem>>, %arg4: memref<1x32x128xf32, #tpu.memory_space<vmem>>, %arg5: memref<1x128x128xf32, #tpu.memory_space<vmem>>, %arg6: memref<1x1x128xf32, #tpu.memory_space<vmem>>, %arg7: memref<1x1x128xf32, #tpu.memory_space<vmem>>, %arg8: memref<1x8x128xf32, #tpu.memory_space<vmem>>) attributes {dimension_semantics = [#tpu.dimension_semantics<parallel>], iteration_bounds = array<i64: 2>, scalar_prefetch = 2 : i64, scratch_operands = 0 : i64, tpu.core_type = #tpu.core_type<tc>, window_params = [{transform_indices = @transform_0, window_bounds = array<i64: 1, 64, 32>}, {transform_indices = @transform_1, window_bounds = array<i64: 1, 32, 128>}, {transform_indices = @transform_2, window_bounds = array<i64: 1, 128, 128>}, {transform_indices = @transform_3, window_bounds = array<i64: 1, 1, 128>}, {transform_indices = @transform_4, window_bounds = array<i64: 1, 1, 128>}, {transform_indices = @transform_5, window_bounds = array<i64: 1, 8, 128>}]} {
    %0 = arith.index_cast %arg0 : i32 to index
    %c0 = arith.constant 0 : index
    %1 = memref.load %arg2[%0, %c0] : memref<2x8xi32, #tpu.memory_space<smem>>
    %cst = arith.constant 0.000000e+00 : f32
    %2 = vector.broadcast %cst : f32 to vector<1x32xf32>
    %3 = arith.index_cast %arg0 : i32 to index
    %c0_0 = arith.constant 0 : index
    %4 = memref.load %arg1[%3, %c0_0] : memref<2x32xi32, #tpu.memory_space<smem>>
    %c0_i32 = arith.constant 0 : i32
    %c63_i32 = arith.constant 63 : i32
    %5 = arith.maxsi %c0_i32, %4 : i32
    %6 = arith.minsi %c63_i32, %5 : i32
    %c0_1 = arith.constant 0 : index
    %7 = arith.index_cast %6 : i32 to index
    %c0_2 = arith.constant 0 : index
    %8 = vector.load %arg3[%c0_1, %7, %c0_2] : memref<1x64x32xf32, #tpu.memory_space<vmem>>, vector<1x1x32xf32>
    %9 = vector.shape_cast %8 : vector<1x1x32xf32> to vector<1x32xf32>
    %c0_i32_3 = arith.constant 0 : i32
    %10 = arith.cmpi sgt, %1, %c0_i32_3 : i32
    %11 = arith.extui %10 : i1 to i32
    %12 = arith.sitofp %11 : i32 to f32
    %13 = vector.broadcast %12 : f32 to vector<1x32xf32>
    %14 = arith.mulf %9, %13 : vector<1x32xf32>
    %15 = arith.addf %2, %14 : vector<1x32xf32>
    %16 = arith.index_cast %arg0 : i32 to index
    %c1 = arith.constant 1 : index
    %17 = memref.load %arg1[%16, %c1] : memref<2x32xi32, #tpu.memory_space<smem>>
    %c0_i32_4 = arith.constant 0 : i32
    %c63_i32_5 = arith.constant 63 : i32
    %18 = arith.maxsi %c0_i32_4, %17 : i32
    %19 = arith.minsi %c63_i32_5, %18 : i32
    %c0_6 = arith.constant 0 : index
    %20 = arith.index_cast %19 : i32 to index
    %c0_7 = arith.constant 0 : index
    %21 = vector.load %arg3[%c0_6, %20, %c0_7] : memref<1x64x32xf32, #tpu.memory_space<vmem>>, vector<1x1x32xf32>
    %22 = vector.shape_cast %21 : vector<1x1x32xf32> to vector<1x32xf32>
    %c1_i32 = arith.constant 1 : i32
    %23 = arith.cmpi sgt, %1, %c1_i32 : i32
    %24 = arith.extui %23 : i1 to i32
    %25 = arith.sitofp %24 : i32 to f32
    %26 = vector.broadcast %25 : f32 to vector<1x32xf32>
    %27 = arith.mulf %22, %26 : vector<1x32xf32>
    %28 = arith.addf %15, %27 : vector<1x32xf32>
    %29 = arith.index_cast %arg0 : i32 to index
    %c2 = arith.constant 2 : index
    %30 = memref.load %arg1[%29, %c2] : memref<2x32xi32, #tpu.memory_space<smem>>
    %c0_i32_8 = arith.constant 0 : i32
    %c63_i32_9 = arith.constant 63 : i32
    %31 = arith.maxsi %c0_i32_8, %30 : i32
    %32 = arith.minsi %c63_i32_9, %31 : i32
    %c0_10 = arith.constant 0 : index
    %33 = arith.index_cast %32 : i32 to index
    %c0_11 = arith.constant 0 : index
    %34 = vector.load %arg3[%c0_10, %33, %c0_11] : memref<1x64x32xf32, #tpu.memory_space<vmem>>, vector<1x1x32xf32>
    %35 = vector.shape_cast %34 : vector<1x1x32xf32> to vector<1x32xf32>
    %c2_i32 = arith.constant 2 : i32
    %36 = arith.cmpi sgt, %1, %c2_i32 : i32
    %37 = arith.extui %36 : i1 to i32
    %38 = arith.sitofp %37 : i32 to f32
    %39 = vector.broadcast %38 : f32 to vector<1x32xf32>
    %40 = arith.mulf %35, %39 : vector<1x32xf32>
    %41 = arith.addf %28, %40 : vector<1x32xf32>
    %42 = arith.index_cast %arg0 : i32 to index
    %c3 = arith.constant 3 : index
    %43 = memref.load %arg1[%42, %c3] : memref<2x32xi32, #tpu.memory_space<smem>>
    %c0_i32_12 = arith.constant 0 : i32
    %c63_i32_13 = arith.constant 63 : i32
    %44 = arith.maxsi %c0_i32_12, %43 : i32
    %45 = arith.minsi %c63_i32_13, %44 : i32
    %c0_14 = arith.constant 0 : index
    %46 = arith.index_cast %45 : i32 to index
    %c0_15 = arith.constant 0 : index
    %47 = vector.load %arg3[%c0_14, %46, %c0_15] : memref<1x64x32xf32, #tpu.memory_space<vmem>>, vector<1x1x32xf32>
    %48 = vector.shape_cast %47 : vector<1x1x32xf32> to vector<1x32xf32>
    %c3_i32 = arith.constant 3 : i32
    %49 = arith.cmpi sgt, %1, %c3_i32 : i32
    %50 = arith.extui %49 : i1 to i32
    %51 = arith.sitofp %50 : i32 to f32
    %52 = vector.broadcast %51 : f32 to vector<1x32xf32>
    %53 = arith.mulf %48, %52 : vector<1x32xf32>
    %54 = arith.addf %41, %53 : vector<1x32xf32>
    %55 = arith.index_cast %arg0 : i32 to index
    %c1_16 = arith.constant 1 : index
    %56 = memref.load %arg2[%55, %c1_16] : memref<2x8xi32, #tpu.memory_space<smem>>
    %cst_17 = arith.constant 0.000000e+00 : f32
    %57 = vector.broadcast %cst_17 : f32 to vector<1x32xf32>
    %58 = arith.index_cast %arg0 : i32 to index
    %c4 = arith.constant 4 : index
    %59 = memref.load %arg1[%58, %c4] : memref<2x32xi32, #tpu.memory_space<smem>>
    %c0_i32_18 = arith.constant 0 : i32
    %c63_i32_19 = arith.constant 63 : i32
    %60 = arith.maxsi %c0_i32_18, %59 : i32
    %61 = arith.minsi %c63_i32_19, %60 : i32
    %c0_20 = arith.constant 0 : index
    %62 = arith.index_cast %61 : i32 to index
    %c0_21 = arith.constant 0 : index
    %63 = vector.load %arg3[%c0_20, %62, %c0_21] : memref<1x64x32xf32, #tpu.memory_space<vmem>>, vector<1x1x32xf32>
    %64 = vector.shape_cast %63 : vector<1x1x32xf32> to vector<1x32xf32>
    %c0_i32_22 = arith.constant 0 : i32
    %65 = arith.cmpi sgt, %56, %c0_i32_22 : i32
    %66 = arith.extui %65 : i1 to i32
    %67 = arith.sitofp %66 : i32 to f32
    %68 = vector.broadcast %67 : f32 to vector<1x32xf32>
    %69 = arith.mulf %64, %68 : vector<1x32xf32>
    %70 = arith.addf %57, %69 : vector<1x32xf32>
    %71 = arith.index_cast %arg0 : i32 to index
    %c5 = arith.constant 5 : index
    %72 = memref.load %arg1[%71, %c5] : memref<2x32xi32, #tpu.memory_space<smem>>
    %c0_i32_23 = arith.constant 0 : i32
    %c63_i32_24 = arith.constant 63 : i32
    %73 = arith.maxsi %c0_i32_23, %72 : i32
    %74 = arith.minsi %c63_i32_24, %73 : i32
    %c0_25 = arith.constant 0 : index
    %75 = arith.index_cast %74 : i32 to index
    %c0_26 = arith.constant 0 : index
    %76 = vector.load %arg3[%c0_25, %75, %c0_26] : memref<1x64x32xf32, #tpu.memory_space<vmem>>, vector<1x1x32xf32>
    %77 = vector.shape_cast %76 : vector<1x1x32xf32> to vector<1x32xf32>
    %c1_i32_27 = arith.constant 1 : i32
    %78 = arith.cmpi sgt, %56, %c1_i32_27 : i32
    %79 = arith.extui %78 : i1 to i32
    %80 = arith.sitofp %79 : i32 to f32
    %81 = vector.broadcast %80 : f32 to vector<1x32xf32>
    %82 = arith.mulf %77, %81 : vector<1x32xf32>
    %83 = arith.addf %70, %82 : vector<1x32xf32>
    %84 = arith.index_cast %arg0 : i32 to index
    %c6 = arith.constant 6 : index
    %85 = memref.load %arg1[%84, %c6] : memref<2x32xi32, #tpu.memory_space<smem>>
    %c0_i32_28 = arith.constant 0 : i32
    %c63_i32_29 = arith.constant 63 : i32
    %86 = arith.maxsi %c0_i32_28, %85 : i32
    %87 = arith.minsi %c63_i32_29, %86 : i32
    %c0_30 = arith.constant 0 : index
    %88 = arith.index_cast %87 : i32 to index
    %c0_31 = arith.constant 0 : index
    %89 = vector.load %arg3[%c0_30, %88, %c0_31] : memref<1x64x32xf32, #tpu.memory_space<vmem>>, vector<1x1x32xf32>
    %90 = vector.shape_cast %89 : vector<1x1x32xf32> to vector<1x32xf32>
    %c2_i32_32 = arith.constant 2 : i32
    %91 = arith.cmpi sgt, %56, %c2_i32_32 : i32
    %92 = arith.extui %91 : i1 to i32
    %93 = arith.sitofp %92 : i32 to f32
    %94 = vector.broadcast %93 : f32 to vector<1x32xf32>
    %95 = arith.mulf %90, %94 : vector<1x32xf32>
    %96 = arith.addf %83, %95 : vector<1x32xf32>
    %97 = arith.index_cast %arg0 : i32 to index
    %c7 = arith.constant 7 : index
    %98 = memref.load %arg1[%97, %c7] : memref<2x32xi32, #tpu.memory_space<smem>>
    %c0_i32_33 = arith.constant 0 : i32
    %c63_i32_34 = arith.constant 63 : i32
    %99 = arith.maxsi %c0_i32_33, %98 : i32
    %100 = arith.minsi %c63_i32_34, %99 : i32
    %c0_35 = arith.constant 0 : index
    %101 = arith.index_cast %100 : i32 to index
    %c0_36 = arith.constant 0 : index
    %102 = vector.load %arg3[%c0_35, %101, %c0_36] : memref<1x64x32xf32, #tpu.memory_space<vmem>>, vector<1x1x32xf32>
    %103 = vector.shape_cast %102 : vector<1x1x32xf32> to vector<1x32xf32>
    %c3_i32_37 = arith.constant 3 : i32
    %104 = arith.cmpi sgt, %56, %c3_i32_37 : i32
    %105 = arith.extui %104 : i1 to i32
    %106 = arith.sitofp %105 : i32 to f32
    %107 = vector.broadcast %106 : f32 to vector<1x32xf32>
    %108 = arith.mulf %103, %107 : vector<1x32xf32>
    %109 = arith.addf %96, %108 : vector<1x32xf32>
    %110 = arith.index_cast %arg0 : i32 to index
    %c2_38 = arith.constant 2 : index
    %111 = memref.load %arg2[%110, %c2_38] : memref<2x8xi32, #tpu.memory_space<smem>>
    %cst_39 = arith.constant 0.000000e+00 : f32
    %112 = vector.broadcast %cst_39 : f32 to vector<1x32xf32>
    %113 = arith.index_cast %arg0 : i32 to index
    %c8 = arith.constant 8 : index
    %114 = memref.load %arg1[%113, %c8] : memref<2x32xi32, #tpu.memory_space<smem>>
    %c0_i32_40 = arith.constant 0 : i32
    %c63_i32_41 = arith.constant 63 : i32
    %115 = arith.maxsi %c0_i32_40, %114 : i32
    %116 = arith.minsi %c63_i32_41, %115 : i32
    %c0_42 = arith.constant 0 : index
    %117 = arith.index_cast %116 : i32 to index
    %c0_43 = arith.constant 0 : index
    %118 = vector.load %arg3[%c0_42, %117, %c0_43] : memref<1x64x32xf32, #tpu.memory_space<vmem>>, vector<1x1x32xf32>
    %119 = vector.shape_cast %118 : vector<1x1x32xf32> to vector<1x32xf32>
    %c0_i32_44 = arith.constant 0 : i32
    %120 = arith.cmpi sgt, %111, %c0_i32_44 : i32
    %121 = arith.extui %120 : i1 to i32
    %122 = arith.sitofp %121 : i32 to f32
    %123 = vector.broadcast %122 : f32 to vector<1x32xf32>
    %124 = arith.mulf %119, %123 : vector<1x32xf32>
    %125 = arith.addf %112, %124 : vector<1x32xf32>
    %126 = arith.index_cast %arg0 : i32 to index
    %c9 = arith.constant 9 : index
    %127 = memref.load %arg1[%126, %c9] : memref<2x32xi32, #tpu.memory_space<smem>>
    %c0_i32_45 = arith.constant 0 : i32
    %c63_i32_46 = arith.constant 63 : i32
    %128 = arith.maxsi %c0_i32_45, %127 : i32
    %129 = arith.minsi %c63_i32_46, %128 : i32
    %c0_47 = arith.constant 0 : index
    %130 = arith.index_cast %129 : i32 to index
    %c0_48 = arith.constant 0 : index
    %131 = vector.load %arg3[%c0_47, %130, %c0_48] : memref<1x64x32xf32, #tpu.memory_space<vmem>>, vector<1x1x32xf32>
    %132 = vector.shape_cast %131 : vector<1x1x32xf32> to vector<1x32xf32>
    %c1_i32_49 = arith.constant 1 : i32
    %133 = arith.cmpi sgt, %111, %c1_i32_49 : i32
    %134 = arith.extui %133 : i1 to i32
    %135 = arith.sitofp %134 : i32 to f32
    %136 = vector.broadcast %135 : f32 to vector<1x32xf32>
    %137 = arith.mulf %132, %136 : vector<1x32xf32>
    %138 = arith.addf %125, %137 : vector<1x32xf32>
    %139 = arith.index_cast %arg0 : i32 to index
    %c10 = arith.constant 10 : index
    %140 = memref.load %arg1[%139, %c10] : memref<2x32xi32, #tpu.memory_space<smem>>
    %c0_i32_50 = arith.constant 0 : i32
    %c63_i32_51 = arith.constant 63 : i32
    %141 = arith.maxsi %c0_i32_50, %140 : i32
    %142 = arith.minsi %c63_i32_51, %141 : i32
    %c0_52 = arith.constant 0 : index
    %143 = arith.index_cast %142 : i32 to index
    %c0_53 = arith.constant 0 : index
    %144 = vector.load %arg3[%c0_52, %143, %c0_53] : memref<1x64x32xf32, #tpu.memory_space<vmem>>, vector<1x1x32xf32>
    %145 = vector.shape_cast %144 : vector<1x1x32xf32> to vector<1x32xf32>
    %c2_i32_54 = arith.constant 2 : i32
    %146 = arith.cmpi sgt, %111, %c2_i32_54 : i32
    %147 = arith.extui %146 : i1 to i32
    %148 = arith.sitofp %147 : i32 to f32
    %149 = vector.broadcast %148 : f32 to vector<1x32xf32>
    %150 = arith.mulf %145, %149 : vector<1x32xf32>
    %151 = arith.addf %138, %150 : vector<1x32xf32>
    %152 = arith.index_cast %arg0 : i32 to index
    %c11 = arith.constant 11 : index
    %153 = memref.load %arg1[%152, %c11] : memref<2x32xi32, #tpu.memory_space<smem>>
    %c0_i32_55 = arith.constant 0 : i32
    %c63_i32_56 = arith.constant 63 : i32
    %154 = arith.maxsi %c0_i32_55, %153 : i32
    %155 = arith.minsi %c63_i32_56, %154 : i32
    %c0_57 = arith.constant 0 : index
    %156 = arith.index_cast %155 : i32 to index
    %c0_58 = arith.constant 0 : index
    %157 = vector.load %arg3[%c0_57, %156, %c0_58] : memref<1x64x32xf32, #tpu.memory_space<vmem>>, vector<1x1x32xf32>
    %158 = vector.shape_cast %157 : vector<1x1x32xf32> to vector<1x32xf32>
    %c3_i32_59 = arith.constant 3 : i32
    %159 = arith.cmpi sgt, %111, %c3_i32_59 : i32
    %160 = arith.extui %159 : i1 to i32
    %161 = arith.sitofp %160 : i32 to f32
    %162 = vector.broadcast %161 : f32 to vector<1x32xf32>
    %163 = arith.mulf %158, %162 : vector<1x32xf32>
    %164 = arith.addf %151, %163 : vector<1x32xf32>
    %165 = arith.index_cast %arg0 : i32 to index
    %c3_60 = arith.constant 3 : index
    %166 = memref.load %arg2[%165, %c3_60] : memref<2x8xi32, #tpu.memory_space<smem>>
    %cst_61 = arith.constant 0.000000e+00 : f32
    %167 = vector.broadcast %cst_61 : f32 to vector<1x32xf32>
    %168 = arith.index_cast %arg0 : i32 to index
    %c12 = arith.constant 12 : index
    %169 = memref.load %arg1[%168, %c12] : memref<2x32xi32, #tpu.memory_space<smem>>
    %c0_i32_62 = arith.constant 0 : i32
    %c63_i32_63 = arith.constant 63 : i32
    %170 = arith.maxsi %c0_i32_62, %169 : i32
    %171 = arith.minsi %c63_i32_63, %170 : i32
    %c0_64 = arith.constant 0 : index
    %172 = arith.index_cast %171 : i32 to index
    %c0_65 = arith.constant 0 : index
    %173 = vector.load %arg3[%c0_64, %172, %c0_65] : memref<1x64x32xf32, #tpu.memory_space<vmem>>, vector<1x1x32xf32>
    %174 = vector.shape_cast %173 : vector<1x1x32xf32> to vector<1x32xf32>
    %c0_i32_66 = arith.constant 0 : i32
    %175 = arith.cmpi sgt, %166, %c0_i32_66 : i32
    %176 = arith.extui %175 : i1 to i32
    %177 = arith.sitofp %176 : i32 to f32
    %178 = vector.broadcast %177 : f32 to vector<1x32xf32>
    %179 = arith.mulf %174, %178 : vector<1x32xf32>
    %180 = arith.addf %167, %179 : vector<1x32xf32>
    %181 = arith.index_cast %arg0 : i32 to index
    %c13 = arith.constant 13 : index
    %182 = memref.load %arg1[%181, %c13] : memref<2x32xi32, #tpu.memory_space<smem>>
    %c0_i32_67 = arith.constant 0 : i32
    %c63_i32_68 = arith.constant 63 : i32
    %183 = arith.maxsi %c0_i32_67, %182 : i32
    %184 = arith.minsi %c63_i32_68, %183 : i32
    %c0_69 = arith.constant 0 : index
    %185 = arith.index_cast %184 : i32 to index
    %c0_70 = arith.constant 0 : index
    %186 = vector.load %arg3[%c0_69, %185, %c0_70] : memref<1x64x32xf32, #tpu.memory_space<vmem>>, vector<1x1x32xf32>
    %187 = vector.shape_cast %186 : vector<1x1x32xf32> to vector<1x32xf32>
    %c1_i32_71 = arith.constant 1 : i32
    %188 = arith.cmpi sgt, %166, %c1_i32_71 : i32
    %189 = arith.extui %188 : i1 to i32
    %190 = arith.sitofp %189 : i32 to f32
    %191 = vector.broadcast %190 : f32 to vector<1x32xf32>
    %192 = arith.mulf %187, %191 : vector<1x32xf32>
    %193 = arith.addf %180, %192 : vector<1x32xf32>
    %194 = arith.index_cast %arg0 : i32 to index
    %c14 = arith.constant 14 : index
    %195 = memref.load %arg1[%194, %c14] : memref<2x32xi32, #tpu.memory_space<smem>>
    %c0_i32_72 = arith.constant 0 : i32
    %c63_i32_73 = arith.constant 63 : i32
    %196 = arith.maxsi %c0_i32_72, %195 : i32
    %197 = arith.minsi %c63_i32_73, %196 : i32
    %c0_74 = arith.constant 0 : index
    %198 = arith.index_cast %197 : i32 to index
    %c0_75 = arith.constant 0 : index
    %199 = vector.load %arg3[%c0_74, %198, %c0_75] : memref<1x64x32xf32, #tpu.memory_space<vmem>>, vector<1x1x32xf32>
    %200 = vector.shape_cast %199 : vector<1x1x32xf32> to vector<1x32xf32>
    %c2_i32_76 = arith.constant 2 : i32
    %201 = arith.cmpi sgt, %166, %c2_i32_76 : i32
    %202 = arith.extui %201 : i1 to i32
    %203 = arith.sitofp %202 : i32 to f32
    %204 = vector.broadcast %203 : f32 to vector<1x32xf32>
    %205 = arith.mulf %200, %204 : vector<1x32xf32>
    %206 = arith.addf %193, %205 : vector<1x32xf32>
    %207 = arith.index_cast %arg0 : i32 to index
    %c15 = arith.constant 15 : index
    %208 = memref.load %arg1[%207, %c15] : memref<2x32xi32, #tpu.memory_space<smem>>
    %c0_i32_77 = arith.constant 0 : i32
    %c63_i32_78 = arith.constant 63 : i32
    %209 = arith.maxsi %c0_i32_77, %208 : i32
    %210 = arith.minsi %c63_i32_78, %209 : i32
    %c0_79 = arith.constant 0 : index
    %211 = arith.index_cast %210 : i32 to index
    %c0_80 = arith.constant 0 : index
    %212 = vector.load %arg3[%c0_79, %211, %c0_80] : memref<1x64x32xf32, #tpu.memory_space<vmem>>, vector<1x1x32xf32>
    %213 = vector.shape_cast %212 : vector<1x1x32xf32> to vector<1x32xf32>
    %c3_i32_81 = arith.constant 3 : i32
    %214 = arith.cmpi sgt, %166, %c3_i32_81 : i32
    %215 = arith.extui %214 : i1 to i32
    %216 = arith.sitofp %215 : i32 to f32
    %217 = vector.broadcast %216 : f32 to vector<1x32xf32>
    %218 = arith.mulf %213, %217 : vector<1x32xf32>
    %219 = arith.addf %206, %218 : vector<1x32xf32>
    %220 = arith.index_cast %arg0 : i32 to index
    %c4_82 = arith.constant 4 : index
    %221 = memref.load %arg2[%220, %c4_82] : memref<2x8xi32, #tpu.memory_space<smem>>
    %cst_83 = arith.constant 0.000000e+00 : f32
    %222 = vector.broadcast %cst_83 : f32 to vector<1x32xf32>
    %223 = arith.index_cast %arg0 : i32 to index
    %c16 = arith.constant 16 : index
    %224 = memref.load %arg1[%223, %c16] : memref<2x32xi32, #tpu.memory_space<smem>>
    %c0_i32_84 = arith.constant 0 : i32
    %c63_i32_85 = arith.constant 63 : i32
    %225 = arith.maxsi %c0_i32_84, %224 : i32
    %226 = arith.minsi %c63_i32_85, %225 : i32
    %c0_86 = arith.constant 0 : index
    %227 = arith.index_cast %226 : i32 to index
    %c0_87 = arith.constant 0 : index
    %228 = vector.load %arg3[%c0_86, %227, %c0_87] : memref<1x64x32xf32, #tpu.memory_space<vmem>>, vector<1x1x32xf32>
    %229 = vector.shape_cast %228 : vector<1x1x32xf32> to vector<1x32xf32>
    %c0_i32_88 = arith.constant 0 : i32
    %230 = arith.cmpi sgt, %221, %c0_i32_88 : i32
    %231 = arith.extui %230 : i1 to i32
    %232 = arith.sitofp %231 : i32 to f32
    %233 = vector.broadcast %232 : f32 to vector<1x32xf32>
    %234 = arith.mulf %229, %233 : vector<1x32xf32>
    %235 = arith.addf %222, %234 : vector<1x32xf32>
    %236 = arith.index_cast %arg0 : i32 to index
    %c17 = arith.constant 17 : index
    %237 = memref.load %arg1[%236, %c17] : memref<2x32xi32, #tpu.memory_space<smem>>
    %c0_i32_89 = arith.constant 0 : i32
    %c63_i32_90 = arith.constant 63 : i32
    %238 = arith.maxsi %c0_i32_89, %237 : i32
    %239 = arith.minsi %c63_i32_90, %238 : i32
    %c0_91 = arith.constant 0 : index
    %240 = arith.index_cast %239 : i32 to index
    %c0_92 = arith.constant 0 : index
    %241 = vector.load %arg3[%c0_91, %240, %c0_92] : memref<1x64x32xf32, #tpu.memory_space<vmem>>, vector<1x1x32xf32>
    %242 = vector.shape_cast %241 : vector<1x1x32xf32> to vector<1x32xf32>
    %c1_i32_93 = arith.constant 1 : i32
    %243 = arith.cmpi sgt, %221, %c1_i32_93 : i32
    %244 = arith.extui %243 : i1 to i32
    %245 = arith.sitofp %244 : i32 to f32
    %246 = vector.broadcast %245 : f32 to vector<1x32xf32>
    %247 = arith.mulf %242, %246 : vector<1x32xf32>
    %248 = arith.addf %235, %247 : vector<1x32xf32>
    %249 = arith.index_cast %arg0 : i32 to index
    %c18 = arith.constant 18 : index
    %250 = memref.load %arg1[%249, %c18] : memref<2x32xi32, #tpu.memory_space<smem>>
    %c0_i32_94 = arith.constant 0 : i32
    %c63_i32_95 = arith.constant 63 : i32
    %251 = arith.maxsi %c0_i32_94, %250 : i32
    %252 = arith.minsi %c63_i32_95, %251 : i32
    %c0_96 = arith.constant 0 : index
    %253 = arith.index_cast %252 : i32 to index
    %c0_97 = arith.constant 0 : index
    %254 = vector.load %arg3[%c0_96, %253, %c0_97] : memref<1x64x32xf32, #tpu.memory_space<vmem>>, vector<1x1x32xf32>
    %255 = vector.shape_cast %254 : vector<1x1x32xf32> to vector<1x32xf32>
    %c2_i32_98 = arith.constant 2 : i32
    %256 = arith.cmpi sgt, %221, %c2_i32_98 : i32
    %257 = arith.extui %256 : i1 to i32
    %258 = arith.sitofp %257 : i32 to f32
    %259 = vector.broadcast %258 : f32 to vector<1x32xf32>
    %260 = arith.mulf %255, %259 : vector<1x32xf32>
    %261 = arith.addf %248, %260 : vector<1x32xf32>
    %262 = arith.index_cast %arg0 : i32 to index
    %c19 = arith.constant 19 : index
    %263 = memref.load %arg1[%262, %c19] : memref<2x32xi32, #tpu.memory_space<smem>>
    %c0_i32_99 = arith.constant 0 : i32
    %c63_i32_100 = arith.constant 63 : i32
    %264 = arith.maxsi %c0_i32_99, %263 : i32
    %265 = arith.minsi %c63_i32_100, %264 : i32
    %c0_101 = arith.constant 0 : index
    %266 = arith.index_cast %265 : i32 to index
    %c0_102 = arith.constant 0 : index
    %267 = vector.load %arg3[%c0_101, %266, %c0_102] : memref<1x64x32xf32, #tpu.memory_space<vmem>>, vector<1x1x32xf32>
    %268 = vector.shape_cast %267 : vector<1x1x32xf32> to vector<1x32xf32>
    %c3_i32_103 = arith.constant 3 : i32
    %269 = arith.cmpi sgt, %221, %c3_i32_103 : i32
    %270 = arith.extui %269 : i1 to i32
    %271 = arith.sitofp %270 : i32 to f32
    %272 = vector.broadcast %271 : f32 to vector<1x32xf32>
    %273 = arith.mulf %268, %272 : vector<1x32xf32>
    %274 = arith.addf %261, %273 : vector<1x32xf32>
    %275 = arith.index_cast %arg0 : i32 to index
    %c5_104 = arith.constant 5 : index
    %276 = memref.load %arg2[%275, %c5_104] : memref<2x8xi32, #tpu.memory_space<smem>>
    %cst_105 = arith.constant 0.000000e+00 : f32
    %277 = vector.broadcast %cst_105 : f32 to vector<1x32xf32>
    %278 = arith.index_cast %arg0 : i32 to index
    %c20 = arith.constant 20 : index
    %279 = memref.load %arg1[%278, %c20] : memref<2x32xi32, #tpu.memory_space<smem>>
    %c0_i32_106 = arith.constant 0 : i32
    %c63_i32_107 = arith.constant 63 : i32
    %280 = arith.maxsi %c0_i32_106, %279 : i32
    %281 = arith.minsi %c63_i32_107, %280 : i32
    %c0_108 = arith.constant 0 : index
    %282 = arith.index_cast %281 : i32 to index
    %c0_109 = arith.constant 0 : index
    %283 = vector.load %arg3[%c0_108, %282, %c0_109] : memref<1x64x32xf32, #tpu.memory_space<vmem>>, vector<1x1x32xf32>
    %284 = vector.shape_cast %283 : vector<1x1x32xf32> to vector<1x32xf32>
    %c0_i32_110 = arith.constant 0 : i32
    %285 = arith.cmpi sgt, %276, %c0_i32_110 : i32
    %286 = arith.extui %285 : i1 to i32
    %287 = arith.sitofp %286 : i32 to f32
    %288 = vector.broadcast %287 : f32 to vector<1x32xf32>
    %289 = arith.mulf %284, %288 : vector<1x32xf32>
    %290 = arith.addf %277, %289 : vector<1x32xf32>
    %291 = arith.index_cast %arg0 : i32 to index
    %c21 = arith.constant 21 : index
    %292 = memref.load %arg1[%291, %c21] : memref<2x32xi32, #tpu.memory_space<smem>>
    %c0_i32_111 = arith.constant 0 : i32
    %c63_i32_112 = arith.constant 63 : i32
    %293 = arith.maxsi %c0_i32_111, %292 : i32
    %294 = arith.minsi %c63_i32_112, %293 : i32
    %c0_113 = arith.constant 0 : index
    %295 = arith.index_cast %294 : i32 to index
    %c0_114 = arith.constant 0 : index
    %296 = vector.load %arg3[%c0_113, %295, %c0_114] : memref<1x64x32xf32, #tpu.memory_space<vmem>>, vector<1x1x32xf32>
    %297 = vector.shape_cast %296 : vector<1x1x32xf32> to vector<1x32xf32>
    %c1_i32_115 = arith.constant 1 : i32
    %298 = arith.cmpi sgt, %276, %c1_i32_115 : i32
    %299 = arith.extui %298 : i1 to i32
    %300 = arith.sitofp %299 : i32 to f32
    %301 = vector.broadcast %300 : f32 to vector<1x32xf32>
    %302 = arith.mulf %297, %301 : vector<1x32xf32>
    %303 = arith.addf %290, %302 : vector<1x32xf32>
    %304 = arith.index_cast %arg0 : i32 to index
    %c22 = arith.constant 22 : index
    %305 = memref.load %arg1[%304, %c22] : memref<2x32xi32, #tpu.memory_space<smem>>
    %c0_i32_116 = arith.constant 0 : i32
    %c63_i32_117 = arith.constant 63 : i32
    %306 = arith.maxsi %c0_i32_116, %305 : i32
    %307 = arith.minsi %c63_i32_117, %306 : i32
    %c0_118 = arith.constant 0 : index
    %308 = arith.index_cast %307 : i32 to index
    %c0_119 = arith.constant 0 : index
    %309 = vector.load %arg3[%c0_118, %308, %c0_119] : memref<1x64x32xf32, #tpu.memory_space<vmem>>, vector<1x1x32xf32>
    %310 = vector.shape_cast %309 : vector<1x1x32xf32> to vector<1x32xf32>
    %c2_i32_120 = arith.constant 2 : i32
    %311 = arith.cmpi sgt, %276, %c2_i32_120 : i32
    %312 = arith.extui %311 : i1 to i32
    %313 = arith.sitofp %312 : i32 to f32
    %314 = vector.broadcast %313 : f32 to vector<1x32xf32>
    %315 = arith.mulf %310, %314 : vector<1x32xf32>
    %316 = arith.addf %303, %315 : vector<1x32xf32>
    %317 = arith.index_cast %arg0 : i32 to index
    %c23 = arith.constant 23 : index
    %318 = memref.load %arg1[%317, %c23] : memref<2x32xi32, #tpu.memory_space<smem>>
    %c0_i32_121 = arith.constant 0 : i32
    %c63_i32_122 = arith.constant 63 : i32
    %319 = arith.maxsi %c0_i32_121, %318 : i32
    %320 = arith.minsi %c63_i32_122, %319 : i32
    %c0_123 = arith.constant 0 : index
    %321 = arith.index_cast %320 : i32 to index
    %c0_124 = arith.constant 0 : index
    %322 = vector.load %arg3[%c0_123, %321, %c0_124] : memref<1x64x32xf32, #tpu.memory_space<vmem>>, vector<1x1x32xf32>
    %323 = vector.shape_cast %322 : vector<1x1x32xf32> to vector<1x32xf32>
    %c3_i32_125 = arith.constant 3 : i32
    %324 = arith.cmpi sgt, %276, %c3_i32_125 : i32
    %325 = arith.extui %324 : i1 to i32
    %326 = arith.sitofp %325 : i32 to f32
    %327 = vector.broadcast %326 : f32 to vector<1x32xf32>
    %328 = arith.mulf %323, %327 : vector<1x32xf32>
    %329 = arith.addf %316, %328 : vector<1x32xf32>
    %330 = arith.index_cast %arg0 : i32 to index
    %c6_126 = arith.constant 6 : index
    %331 = memref.load %arg2[%330, %c6_126] : memref<2x8xi32, #tpu.memory_space<smem>>
    %cst_127 = arith.constant 0.000000e+00 : f32
    %332 = vector.broadcast %cst_127 : f32 to vector<1x32xf32>
    %333 = arith.index_cast %arg0 : i32 to index
    %c24 = arith.constant 24 : index
    %334 = memref.load %arg1[%333, %c24] : memref<2x32xi32, #tpu.memory_space<smem>>
    %c0_i32_128 = arith.constant 0 : i32
    %c63_i32_129 = arith.constant 63 : i32
    %335 = arith.maxsi %c0_i32_128, %334 : i32
    %336 = arith.minsi %c63_i32_129, %335 : i32
    %c0_130 = arith.constant 0 : index
    %337 = arith.index_cast %336 : i32 to index
    %c0_131 = arith.constant 0 : index
    %338 = vector.load %arg3[%c0_130, %337, %c0_131] : memref<1x64x32xf32, #tpu.memory_space<vmem>>, vector<1x1x32xf32>
    %339 = vector.shape_cast %338 : vector<1x1x32xf32> to vector<1x32xf32>
    %c0_i32_132 = arith.constant 0 : i32
    %340 = arith.cmpi sgt, %331, %c0_i32_132 : i32
    %341 = arith.extui %340 : i1 to i32
    %342 = arith.sitofp %341 : i32 to f32
    %343 = vector.broadcast %342 : f32 to vector<1x32xf32>
    %344 = arith.mulf %339, %343 : vector<1x32xf32>
    %345 = arith.addf %332, %344 : vector<1x32xf32>
    %346 = arith.index_cast %arg0 : i32 to index
    %c25 = arith.constant 25 : index
    %347 = memref.load %arg1[%346, %c25] : memref<2x32xi32, #tpu.memory_space<smem>>
    %c0_i32_133 = arith.constant 0 : i32
    %c63_i32_134 = arith.constant 63 : i32
    %348 = arith.maxsi %c0_i32_133, %347 : i32
    %349 = arith.minsi %c63_i32_134, %348 : i32
    %c0_135 = arith.constant 0 : index
    %350 = arith.index_cast %349 : i32 to index
    %c0_136 = arith.constant 0 : index
    %351 = vector.load %arg3[%c0_135, %350, %c0_136] : memref<1x64x32xf32, #tpu.memory_space<vmem>>, vector<1x1x32xf32>
    %352 = vector.shape_cast %351 : vector<1x1x32xf32> to vector<1x32xf32>
    %c1_i32_137 = arith.constant 1 : i32
    %353 = arith.cmpi sgt, %331, %c1_i32_137 : i32
    %354 = arith.extui %353 : i1 to i32
    %355 = arith.sitofp %354 : i32 to f32
    %356 = vector.broadcast %355 : f32 to vector<1x32xf32>
    %357 = arith.mulf %352, %356 : vector<1x32xf32>
    %358 = arith.addf %345, %357 : vector<1x32xf32>
    %359 = arith.index_cast %arg0 : i32 to index
    %c26 = arith.constant 26 : index
    %360 = memref.load %arg1[%359, %c26] : memref<2x32xi32, #tpu.memory_space<smem>>
    %c0_i32_138 = arith.constant 0 : i32
    %c63_i32_139 = arith.constant 63 : i32
    %361 = arith.maxsi %c0_i32_138, %360 : i32
    %362 = arith.minsi %c63_i32_139, %361 : i32
    %c0_140 = arith.constant 0 : index
    %363 = arith.index_cast %362 : i32 to index
    %c0_141 = arith.constant 0 : index
    %364 = vector.load %arg3[%c0_140, %363, %c0_141] : memref<1x64x32xf32, #tpu.memory_space<vmem>>, vector<1x1x32xf32>
    %365 = vector.shape_cast %364 : vector<1x1x32xf32> to vector<1x32xf32>
    %c2_i32_142 = arith.constant 2 : i32
    %366 = arith.cmpi sgt, %331, %c2_i32_142 : i32
    %367 = arith.extui %366 : i1 to i32
    %368 = arith.sitofp %367 : i32 to f32
    %369 = vector.broadcast %368 : f32 to vector<1x32xf32>
    %370 = arith.mulf %365, %369 : vector<1x32xf32>
    %371 = arith.addf %358, %370 : vector<1x32xf32>
    %372 = arith.index_cast %arg0 : i32 to index
    %c27 = arith.constant 27 : index
    %373 = memref.load %arg1[%372, %c27] : memref<2x32xi32, #tpu.memory_space<smem>>
    %c0_i32_143 = arith.constant 0 : i32
    %c63_i32_144 = arith.constant 63 : i32
    %374 = arith.maxsi %c0_i32_143, %373 : i32
    %375 = arith.minsi %c63_i32_144, %374 : i32
    %c0_145 = arith.constant 0 : index
    %376 = arith.index_cast %375 : i32 to index
    %c0_146 = arith.constant 0 : index
    %377 = vector.load %arg3[%c0_145, %376, %c0_146] : memref<1x64x32xf32, #tpu.memory_space<vmem>>, vector<1x1x32xf32>
    %378 = vector.shape_cast %377 : vector<1x1x32xf32> to vector<1x32xf32>
    %c3_i32_147 = arith.constant 3 : i32
    %379 = arith.cmpi sgt, %331, %c3_i32_147 : i32
    %380 = arith.extui %379 : i1 to i32
    %381 = arith.sitofp %380 : i32 to f32
    %382 = vector.broadcast %381 : f32 to vector<1x32xf32>
    %383 = arith.mulf %378, %382 : vector<1x32xf32>
    %384 = arith.addf %371, %383 : vector<1x32xf32>
    %385 = arith.index_cast %arg0 : i32 to index
    %c7_148 = arith.constant 7 : index
    %386 = memref.load %arg2[%385, %c7_148] : memref<2x8xi32, #tpu.memory_space<smem>>
    %cst_149 = arith.constant 0.000000e+00 : f32
    %387 = vector.broadcast %cst_149 : f32 to vector<1x32xf32>
    %388 = arith.index_cast %arg0 : i32 to index
    %c28 = arith.constant 28 : index
    %389 = memref.load %arg1[%388, %c28] : memref<2x32xi32, #tpu.memory_space<smem>>
    %c0_i32_150 = arith.constant 0 : i32
    %c63_i32_151 = arith.constant 63 : i32
    %390 = arith.maxsi %c0_i32_150, %389 : i32
    %391 = arith.minsi %c63_i32_151, %390 : i32
    %c0_152 = arith.constant 0 : index
    %392 = arith.index_cast %391 : i32 to index
    %c0_153 = arith.constant 0 : index
    %393 = vector.load %arg3[%c0_152, %392, %c0_153] : memref<1x64x32xf32, #tpu.memory_space<vmem>>, vector<1x1x32xf32>
    %394 = vector.shape_cast %393 : vector<1x1x32xf32> to vector<1x32xf32>
    %c0_i32_154 = arith.constant 0 : i32
    %395 = arith.cmpi sgt, %386, %c0_i32_154 : i32
    %396 = arith.extui %395 : i1 to i32
    %397 = arith.sitofp %396 : i32 to f32
    %398 = vector.broadcast %397 : f32 to vector<1x32xf32>
    %399 = arith.mulf %394, %398 : vector<1x32xf32>
    %400 = arith.addf %387, %399 : vector<1x32xf32>
    %401 = arith.index_cast %arg0 : i32 to index
    %c29 = arith.constant 29 : index
    %402 = memref.load %arg1[%401, %c29] : memref<2x32xi32, #tpu.memory_space<smem>>
    %c0_i32_155 = arith.constant 0 : i32
    %c63_i32_156 = arith.constant 63 : i32
    %403 = arith.maxsi %c0_i32_155, %402 : i32
    %404 = arith.minsi %c63_i32_156, %403 : i32
    %c0_157 = arith.constant 0 : index
    %405 = arith.index_cast %404 : i32 to index
    %c0_158 = arith.constant 0 : index
    %406 = vector.load %arg3[%c0_157, %405, %c0_158] : memref<1x64x32xf32, #tpu.memory_space<vmem>>, vector<1x1x32xf32>
    %407 = vector.shape_cast %406 : vector<1x1x32xf32> to vector<1x32xf32>
    %c1_i32_159 = arith.constant 1 : i32
    %408 = arith.cmpi sgt, %386, %c1_i32_159 : i32
    %409 = arith.extui %408 : i1 to i32
    %410 = arith.sitofp %409 : i32 to f32
    %411 = vector.broadcast %410 : f32 to vector<1x32xf32>
    %412 = arith.mulf %407, %411 : vector<1x32xf32>
    %413 = arith.addf %400, %412 : vector<1x32xf32>
    %414 = arith.index_cast %arg0 : i32 to index
    %c30 = arith.constant 30 : index
    %415 = memref.load %arg1[%414, %c30] : memref<2x32xi32, #tpu.memory_space<smem>>
    %c0_i32_160 = arith.constant 0 : i32
    %c63_i32_161 = arith.constant 63 : i32
    %416 = arith.maxsi %c0_i32_160, %415 : i32
    %417 = arith.minsi %c63_i32_161, %416 : i32
    %c0_162 = arith.constant 0 : index
    %418 = arith.index_cast %417 : i32 to index
    %c0_163 = arith.constant 0 : index
    %419 = vector.load %arg3[%c0_162, %418, %c0_163] : memref<1x64x32xf32, #tpu.memory_space<vmem>>, vector<1x1x32xf32>
    %420 = vector.shape_cast %419 : vector<1x1x32xf32> to vector<1x32xf32>
    %c2_i32_164 = arith.constant 2 : i32
    %421 = arith.cmpi sgt, %386, %c2_i32_164 : i32
    %422 = arith.extui %421 : i1 to i32
    %423 = arith.sitofp %422 : i32 to f32
    %424 = vector.broadcast %423 : f32 to vector<1x32xf32>
    %425 = arith.mulf %420, %424 : vector<1x32xf32>
    %426 = arith.addf %413, %425 : vector<1x32xf32>
    %427 = arith.index_cast %arg0 : i32 to index
    %c31 = arith.constant 31 : index
    %428 = memref.load %arg1[%427, %c31] : memref<2x32xi32, #tpu.memory_space<smem>>
    %c0_i32_165 = arith.constant 0 : i32
    %c63_i32_166 = arith.constant 63 : i32
    %429 = arith.maxsi %c0_i32_165, %428 : i32
    %430 = arith.minsi %c63_i32_166, %429 : i32
    %c0_167 = arith.constant 0 : index
    %431 = arith.index_cast %430 : i32 to index
    %c0_168 = arith.constant 0 : index
    %432 = vector.load %arg3[%c0_167, %431, %c0_168] : memref<1x64x32xf32, #tpu.memory_space<vmem>>, vector<1x1x32xf32>
    %433 = vector.shape_cast %432 : vector<1x1x32xf32> to vector<1x32xf32>
    %c3_i32_169 = arith.constant 3 : i32
    %434 = arith.cmpi sgt, %386, %c3_i32_169 : i32
    %435 = arith.extui %434 : i1 to i32
    %436 = arith.sitofp %435 : i32 to f32
    %437 = vector.broadcast %436 : f32 to vector<1x32xf32>
    %438 = arith.mulf %433, %437 : vector<1x32xf32>
    %439 = arith.addf %426, %438 : vector<1x32xf32>
    %440 = tpu.concatenate %54, %109, %164, %219, %274, %329, %384, %439 in 0 : vector<1x32xf32>, vector<1x32xf32>, vector<1x32xf32>, vector<1x32xf32>, vector<1x32xf32>, vector<1x32xf32>, vector<1x32xf32>, vector<1x32xf32> -> vector<8x32xf32>
    %c0_170 = arith.constant 0 : index
    %c0_171 = arith.constant 0 : index
    %c0_172 = arith.constant 0 : index
    %441 = vector.load %arg4[%c0_170, %c0_171, %c0_172] : memref<1x32x128xf32, #tpu.memory_space<vmem>>, vector<1x32x128xf32>
    %442 = vector.shape_cast %441 : vector<1x32x128xf32> to vector<32x128xf32>
    %cst_173 = arith.constant dense<0.000000e+00> : vector<8x128xf32>
    %443 = tpu.matmul %440, %442, %cst_173 {dimension_numbers = #tpu.dot_dimension_numbers<[1], [0], [0], [1], [0, 0, 1, 1], [], []>} : vector<8x32xf32>, vector<32x128xf32>, vector<8x128xf32> -> vector<8x128xf32>
    %c0_174 = arith.constant 0 : index
    %c0_175 = arith.constant 0 : index
    %c0_176 = arith.constant 0 : index
    %444 = vector.load %arg6[%c0_174, %c0_175, %c0_176] : memref<1x1x128xf32, #tpu.memory_space<vmem>>, vector<1x1x128xf32>
    %445 = vector.shape_cast %444 : vector<1x1x128xf32> to vector<1x128xf32>
    %446 = vector.broadcast %445 : vector<1x128xf32> to vector<8x128xf32>
    %447 = arith.addf %443, %446 : vector<8x128xf32>
    %cst_177 = arith.constant 0.000000e+00 : f32
    %448 = vector.broadcast %cst_177 : f32 to vector<8x128xf32>
    %449 = arith.maximumf %447, %448 : vector<8x128xf32>
    %c0_178 = arith.constant 0 : index
    %c0_179 = arith.constant 0 : index
    %c0_180 = arith.constant 0 : index
    %450 = vector.load %arg5[%c0_178, %c0_179, %c0_180] : memref<1x128x128xf32, #tpu.memory_space<vmem>>, vector<1x128x128xf32>
    %451 = vector.shape_cast %450 : vector<1x128x128xf32> to vector<128x128xf32>
    %cst_181 = arith.constant dense<0.000000e+00> : vector<8x128xf32>
    %452 = tpu.matmul %449, %451, %cst_181 {dimension_numbers = #tpu.dot_dimension_numbers<[1], [0], [0], [1], [0, 0, 1, 1], [], []>} : vector<8x128xf32>, vector<128x128xf32>, vector<8x128xf32> -> vector<8x128xf32>
    %c0_182 = arith.constant 0 : index
    %c0_183 = arith.constant 0 : index
    %c0_184 = arith.constant 0 : index
    %453 = vector.load %arg7[%c0_182, %c0_183, %c0_184] : memref<1x1x128xf32, #tpu.memory_space<vmem>>, vector<1x1x128xf32>
    %454 = vector.shape_cast %453 : vector<1x1x128xf32> to vector<1x128xf32>
    %455 = vector.broadcast %454 : vector<1x128xf32> to vector<8x128xf32>
    %456 = arith.addf %452, %455 : vector<8x128xf32>
    %cst_185 = arith.constant 0.000000e+00 : f32
    %457 = vector.broadcast %cst_185 : f32 to vector<8x128xf32>
    %458 = arith.maximumf %456, %457 : vector<8x128xf32>
    %c0_186 = arith.constant 0 : index
    %c0_187 = arith.constant 0 : index
    %c0_188 = arith.constant 0 : index
    %459 = vector.load %arg8[%c0_186, %c0_187, %c0_188] : memref<1x8x128xf32, #tpu.memory_space<vmem>>, vector<1x8x128xf32>
    %460 = vector.shape_cast %459 : vector<1x8x128xf32> to vector<8x128xf32>
    %461 = vector.shape_cast %458 : vector<8x128xf32> to vector<1x8x128xf32>
    tpu.vector_store %arg8[%c0_186, %c0_187, %c0_188], %461 {strides = array<i32>} : memref<1x8x128xf32, #tpu.memory_space<vmem>>, vector<1x8x128xf32>,
    return
  }
  func.func @transform_0(%arg0: i32, %arg1: memref<2x32xi32, #tpu.memory_space<smem>>, %arg2: memref<2x8xi32, #tpu.memory_space<smem>>) -> (i32, i32, i32) {
    %c0_i32 = arith.constant 0 : i32
    %c0_i32_0 = arith.constant 0 : i32
    %c0_i32_1 = arith.constant 0 : i32
    return %arg0, %c0_i32, %c0_i32_0 : i32, i32, i32
  }
  func.func @transform_1(%arg0: i32, %arg1: memref<2x32xi32, #tpu.memory_space<smem>>, %arg2: memref<2x8xi32, #tpu.memory_space<smem>>) -> (i32, i32, i32) {
    %c0_i32 = arith.constant 0 : i32
    %c0_i32_0 = arith.constant 0 : i32
    %c0_i32_1 = arith.constant 0 : i32
    return %arg0, %c0_i32, %c0_i32_0 : i32, i32, i32
  }
  func.func @transform_2(%arg0: i32, %arg1: memref<2x32xi32, #tpu.memory_space<smem>>, %arg2: memref<2x8xi32, #tpu.memory_space<smem>>) -> (i32, i32, i32) {
    %c0_i32 = arith.constant 0 : i32
    %c0_i32_0 = arith.constant 0 : i32
    %c0_i32_1 = arith.constant 0 : i32
    return %arg0, %c0_i32, %c0_i32_0 : i32, i32, i32
  }
  func.func @transform_3(%arg0: i32, %arg1: memref<2x32xi32, #tpu.memory_space<smem>>, %arg2: memref<2x8xi32, #tpu.memory_space<smem>>) -> (i32, i32, i32) {
    %c0_i32 = arith.constant 0 : i32
    %c0_i32_0 = arith.constant 0 : i32
    %c0_i32_1 = arith.constant 0 : i32
    return %arg0, %c0_i32, %c0_i32_0 : i32, i32, i32
  }
  func.func @transform_4(%arg0: i32, %arg1: memref<2x32xi32, #tpu.memory_space<smem>>, %arg2: memref<2x8xi32, #tpu.memory_space<smem>>) -> (i32, i32, i32) {
    %c0_i32 = arith.constant 0 : i32
    %c0_i32_0 = arith.constant 0 : i32
    %c0_i32_1 = arith.constant 0 : i32
    return %arg0, %c0_i32, %c0_i32_0 : i32, i32, i32
  }
  func.func @transform_5(%arg0: i32, %arg1: memref<2x32xi32, #tpu.memory_space<smem>>, %arg2: memref<2x8xi32, #tpu.memory_space<smem>>) -> (i32, i32, i32) {
    %c0_i32 = arith.constant 0 : i32
    %c0_i32_0 = arith.constant 0 : i32
    %c0_i32_1 = arith.constant 0 : i32
    return %arg0, %c0_i32, %c0_i32_0 : i32, i32, i32
  }
}

</mosaic_0001>

<bundles_post_ra>
// kernel: tpu_custom_call.1
= control target key start
LH: loop header
LB: loop body
LE: loop exit
PB: predicated region body
PF: predicated region fallthrough
CT: control target
= control target key end

     0   :  { %s2474_s0 = inlined_call_operand.vmem [shape: s32[2,32], index: 0, kind: input, shape index: {}]   ;;  %s2475_s2 = inlined_call_operand.vmem [shape: f32[2,64,32], index: 2, kind: input, shape index: {}]   ;;  %s2476_s3 = inlined_call_operand.vmem [shape: f32[2,32,128], index: 3, kind: input, shape index: {}]   ;;  %s2477_s4 = inlined_call_operand.hbm [shape: f32[2,128,128], index: 4, kind: input, shape index: {}]   ;;  %s2478_s5 = inlined_call_operand.vmem [shape: f32[2,1,128], index: 5, kind: input, shape index: {}]   ;;  %s2479_s6 = inlined_call_operand.vmem [shape: f32[2,1,128], index: 6, kind: input, shape index: {}]   ;;  %s2480_s7 = inlined_call_operand.hbm [shape: f32[2,8,128], index: 7, kind: output, shape index: {}]   ;;  %s2481_s1 = inlined_call_operand.vmem [shape: s32[2,8], index: 1, kind: input, shape index: {}]  }
   0x1   :  { %2538 = sst [smem:[#allocation56_spill]] %s2475_s2  ;;  %s12_s26 = sshll.u32 %s2474_s0, 4  ;;  %s13_s26 = int_to_ptr.vmem [resolvable:$true] %s12_s26 }
   0x2   :  { %2539 = sst [smem:[#allocation57_spill]] %s2476_s3  ;;  %s16_s29 = sshll.u32 %s2481_s1, 4  ;;  %s17_s29 = int_to_ptr.vmem [resolvable:$true] %s16_s29 }
   0x3   :  { %2540 = sst [smem:[#allocation58_spill]] %s2477_s4  ;;  %s1552_s30 = scalar_lea.vmem %s13_s26, 32 }
   0x4   :  { %2541 = sst [smem:[#allocation59_spill]] %s2478_s5  ;;  %p1553_p0 = scmp.ne.s32.totalorder %s13_s26, %s1552_s30 }
   0x5   :  { %2542 = sst [smem:[#allocation60_spill]] %s2479_s6  ;;  %p1557_p1 = scmp.lt.s32.totalorder %s13_s26, %s13_s26 }
   0x6   :  { %2543 = sst [smem:[#allocation61_spill]] %s2480_s7  ;;  %p1558_p2 = scmp.lt.s32.totalorder %s1552_s30, %s1552_s30 }
   0x8   :  { %p1559_p3 = por %p1558_p2, %p1557_p1 }
   0xa   :  { %p1560_p4 = pnand %p1559_p3, %p1553_p0 }
   0xc   :  { %1563 = shalt.err (!%p1560_p4)  }
   0xd   :  { %s1676_s8 = smov [#allocation3]   ;;  %s1564_s9 = scalar_lea.vmem %s17_s29, 32 }
   0xe   :  { %15 = dma.vmem_to_smem %s13_s26, 32, %s1676_s8, [#allocation2] }
   0xf   :  { %p1565_p5 = scmp.ne.s32.totalorder %s17_s29, %s1564_s9  ;;  %p1569_p6 = scmp.lt.s32.totalorder %s17_s29, %s17_s29 }
  0x10   :  { %p1570_p7 = scmp.lt.s32.totalorder %s1564_s9, %s1564_s9 }
  0x12   :  { %p1571_p8 = por %p1570_p7, %p1569_p6 }
  0x14   :  { %p1572_p9 = pnand %p1571_p8, %p1565_p5 }
  0x16   :  { %1575 = shalt.err (!%p1572_p9)  }
  0x17   :  { %s1677_s0 = smov [#allocation4]  }
  0x18   :  { %19 = dma.vmem_to_smem %s17_s29, 32, %s1677_s0, [#allocation2] }
  0x19   :  { %1650 = dma.done.wait [#allocation2], 64 }
  0x1a   :  { %1651 = vsyncadd [#allocation2], 4294967232 }
  0x1b   :  { %21 = sfence }
  0x1c   :  { %22 = vsyncpa [#allocation6], 0 }
  0x1d   :  { %24 = vsyncpa [#allocation6 + $0x1], 0 }
  0x1e   :  { %25 = vsyncpa [#allocation7], 0 }
  0x1f   :  { %27 = vsyncpa [#allocation7 + $0x1], 0  ;;  %s1731_s1 = smov 0   ;;  %s1733_s10 = smov 0  }
  0x20   :  { %s1735_s11 = smov 0   ;;  %s1737_s12 = smov 0  }
  0x21 LB: > { %2544 = sst [smem:[#allocation12_spill]] %s1662_s1  ;;  %s1752_s13 = sadd.s32 4294967295, %s1674_s12   ;;  %s1674_s12 = sphi %s1737_s12, %s2706_s12   ;;  %s1670_s11 = sphi %s1735_s11, %s2709_s11   ;;  %s1666_s10 = sphi %s1733_s10, %s2708_s10   ;;  %s1662_s1 = sphi %s1731_s1, %s2707_s1  }
  0x22   : > { %2545 = sst [smem:[#allocation13_spill]] %s1666_s10  ;;  %s1153_s14 = sadd.s32 4294967294, %s1674_s12  }
  0x23   : > { %2546 = sst [smem:[#allocation14_spill]] %s1670_s11  ;;  %s1756_s15 = sadd.s32 1, %s1674_s12  }
  0x24   : > { %2547 = sst [smem:[#allocation15_spill]] %s1674_s12  ;;  %s92_s16 = sadd.s32 1, %s1670_s11 }
  0x25   : > { %2548 = sst [smem:[#allocation16_spill]] %s1756_s15  ;;  %s89_s17 = ssub.s32 %s1674_s12, %s1756_s15 }
  0x26   : > { %p99_p10 = scmp.ne.s32.totalorder %s1670_s11, %s1666_s10  ;;  %p90_p11 = scmp.eq.s32.totalorder %s89_s17, 0 }
  0x27   : > { %p100_p12 = scmp.eq.s32.totalorder %s1674_s12, 0  ;;  %p105_p13 = scmp.ne.s32.totalorder %s1666_s10, %s1662_s1 }
  0x28   : > { %p106_p0 = scmp.eq.s32.totalorder %s1752_s13, 0  ;;  %p181_p3 = scmp.eq.s32.totalorder %s1752_s13, 1 }
  0x29   : > { %s1768_s18 = scalar_select %p90_p11, %s1670_s11, %s92_s16  }
  0x2a   : > { %p1770_p1 = por %p100_p12, %p99_p10  ;;  %p1774_p2 = por %p106_p0, %p105_p13 }
  0x2b   : > { %2549 = sst [smem:[#allocation17_spill]] %s1768_s18  ;;  %p187_p4 = scmp.eq.s32.totalorder %s1153_s14, 1 }
  0x2c   : > { %p1511_p6 = scmp.lt.s32.totalorder %s1674_s12, 2  ;;  %p1781_p7 = por %p181_p3, %p99_p10 }
  0x2d   : > { %p1785_p8 = por %p187_p4, %p105_p13  ;;  %s223_s23 = sand.u32 1, %s1670_s11  }
  0x2e   : > { %s2552_s21 = scalar_select %p1781_p7, 1, 0 }
  0x2f   : > { %s2554_s22 = scalar_select %p1785_p8, 1, 0 }
  0x30   : > { %2553 = sst [smem:[#allocation18_spill]] %s2552_s21  ;;  %s1334_s24 = sshll.u32 %s1674_s12, 11 }
  0x31   : > { %2555 = sst [smem:[#allocation19_spill]] %s2554_s22  ;;  %s1156_s25 = sshll.u32 %s223_s23, 7 }
  0x32   : > { %s2556_s4 = sld [smem:[#allocation58_spill]]  ;;  %s227_s29 = scalar_lea.vmem [#allocation5], %s1156_s25 }
  0x33   : > { %s234_s30 = sshll.u32 %s227_s29, 4  ;;  %p1798_p9 = pnand %p1511_p6, %p1770_p1  ;;  %s1802_s30 = int_to_ptr.vmem [resolvable:$true] %s234_s30 }
  0x34   : > { %s1804_s9 = scalar_lea.sflag [#allocation6], %s223_s23 }
  0x35   : > { %p1578_p11 = pneg %p1798_p9 }
  0x38   : > { %s1794_s28 = scalar_lea.hbm %s2556_s4, %s1334_s24  ;;  %s1581_s17 = scalar_lea.hbm %s2556_s4, 4096 }
  0x39   : > { %s1576_s0 = scalar_lea.hbm %s1794_s28, 2048  ;;  %p1582_p0 = scmp.lt.u32.totalorder %s1794_s28, %s2556_s4 }
  0x3a   : > { %p1577_p10 = scmp.ne.s32.totalorder %s1794_s28, %s1576_s0  ;;  %p1583_p1 = scmp.lt.u32.totalorder %s1581_s17, %s1576_s0 }
  0x3b   : > { %p1585_p4 = scmp.lt.u32.totalorder %s1576_s0, %s1794_s28 }
  0x3c   : > { %p1579_p12 = pnand %p1578_p11, %p1577_p10  ;;  %p1584_p3 = por %p1583_p1, %p1582_p0 }
  0x3e   : > { %p1580_p13 = pneg %p1579_p12  ;;  %p1586_p6 = por %p1585_p4, %p1584_p3 }
  0x40   : > { %p1587_p5 = pnand %p1586_p6, %p1580_p13 }
  0x42   : > { %1590 = shalt.err (!%p1587_p5)
}
  0x43   : > { %s1591_s23 = scalar_lea.vmem %s1802_s30, 2048  ;;  %s1678_s25 = smov [#allocation5]  }
  0x44   : > { %p1592_p10 = scmp.ne.s32.totalorder %s1802_s30, %s1591_s23  ;;  %s1596_s26 = sshll.u32 %s1678_s25, 4  ;;  %s1597_s26 = int_to_ptr.vmem [resolvable:$false] %s1596_s26 }
  0x45   : > { %s1598_s27 = scalar_lea.vmem %s1597_s26, 4096  ;;  %p1599_p7 = scmp.lt.s32.totalorder %s1802_s30, %s1597_s26 }
  0x46   : > { %p1594_p12 = pnand %p1592_p10, %p1578_p11  ;;  %p1600_p0 = scmp.lt.s32.totalorder %s1598_s27, %s1591_s23 }
  0x48   : > { %p1595_p8 = pneg %p1594_p12  ;;  %p1601_p1 = por %p1600_p0, %p1599_p7 }
  0x4a   : > { %p1602_p3 = pnand %p1601_p1, %p1595_p8 }
  0x4c   : > { %1605 = shalt.err (!%p1602_p3)
}
  0x4d   : > { %s1679_s29 = smov 128   ;;  %s1680_s0 = smov 8  }
  0x4e   : > { %1506 = dma.hbm_to_vmem [thread:$0]  (!%p1798_p9), %s1794_s28, 2048, %s1802_s30, %s1804_s9, %s1679_s29, %s1679_s29, %s1680_s0  }
  0x4f   : > { %p1159_p5 = scmp.ge.s32.totalorder %s1674_s12, 1  ;;  %p254_p11 = scmp.lt.s32.totalorder %s1674_s12, 3 }
  0x51   : > { %p255_p13 = pnand %p1159_p5, %p254_p11 }
  0x53   : > { %258 = sbr.rel (%p255_p13) target bundleno = 776 (0x308), region = 40 }
  0x5a   : > { %s1835_s14 = sand.u32 1, %s1666_s10  }
  0x5b   : > { %2558 = sst [smem:[#allocation20_spill]] %s1835_s14  ;;  %s1160_s16 = sshll.u32 %s1835_s14, 7 }
  0x5c   : > { %s261_s17 = scalar_lea.sflag [#allocation6], %s1835_s14  ;;  %s1839_s19 = scalar_lea.vmem [#allocation5], %s1160_s16 }
  0x5d   : > { %2559 = sst [smem:[#allocation21_spill]] %s1839_s19 }
  0x5e   : > { %1653 = dma.done.wait (%p1774_p2), %s261_s17, 2048  }
  0x5f   : > { %1655 = vsyncadd (%p1774_p2), %s261_s17, 4294965248  ;;  %p307_p7 = scmp.lt.s32.totalorder %s1752_s13, 1  ;;  %s1847_s28 = sshll.u32 %s1752_s13, 7  ;;  %v1681_v0 = vmov 0.0|0.0   ;;  %vm1682_vm0 = vmmov 0   ;;  %v1683_v1 = vmov 0.0  }
  0x60   : > { %1469 = vmatprep.subr.bf16.mxu0 %v1681_v0  ;;  %1431 = vmatprep.mubr.msk.f32.mxu0 %vm1682_vm0, %v1683_v1  ;;  %s1851_s20 = sld [smem:[#allocation4 + %s1847_s28]]  ;;  %s338_s8 = sadd.s32 1, %s1847_s28  ;;  %v900_v8 = vld [vmem:[%s1839_s19] sm:$0xff]  ;;  %v901_v9 = vld [vmem:[%s1839_s19 + $0x8] sm:$0xff]  ;;  %v902_v10 = vld [vmem:[%s1839_s19 + $0x10] sm:$0xff]  ;;  %vm800_vm1 = vcmask 1040384  }
  0x61   : > { %s325_s30 = sld [smem:[#allocation3 + %s1847_s28]]  ;;  %s2711_s13 = smov (!%p307_p7, %s1752_s13), 1  ;;  %1475 = vmatprep.subr.bf16.mxu1 %v1681_v0  ;;  %1466 = vmatprep.mubr.msk.f32.mxu1 %vm1682_vm0, %v1683_v1  ;;  %v1476_v11 = vpack.c.bf16 %v901_v9, %v900_v8  ;;  %v903_v12 = vld [vmem:[%s1839_s19 + $0x18] sm:$0xff]  ;;  %v904_v14 = vld [vmem:[%s1839_s19 + $0x20] sm:$0xff]  ;;  %v905_v15 = vld [vmem:[%s1839_s19 + $0x28] sm:$0xff]  ;;  %vm802_vm2 = vcmask 1041408  }
  0x62   : > { %2560 = sst [smem:[#allocation22_spill]] %s2711_s13  ;;  %s2483_s9 = sadd.s32 2, %s1847_s28  ;;  %v1479_v13 = vpack.c.bf16 %v903_v12, %v902_v10  ;;  %v1482_v16 = vpack.c.bf16 %v905_v15, %v904_v14  ;;  %v906_v17 = vld [vmem:[%s1839_s19 + $0x30] sm:$0xff]  ;;  %v907_v18 = vld [vmem:[%s1839_s19 + $0x38] sm:$0xff]  ;;  %v908_v20 = vld [vmem:[%s1839_s19 + $0x40] sm:$0xff]  ;;  %vm804_vm3 = vcmask 1042432  }
  0x63   : > { %s1335_s24 = sshll.u32 %s2711_s13, 6  ;;  %s1336_s23 = sshll.u32 %s2711_s13, 5  ;;  %1477 = vmatpush3.bf16.msra.mxu1 %v1476_v11  ;;  %v1485_v19 = vpack.c.bf16 %v907_v18, %v906_v17  ;;  %v909_v21 = vld [vmem:[%s1839_s19 + $0x48] sm:$0xff]  ;;  %v910_v23 = vld [vmem:[%s1839_s19 + $0x50] sm:$0xff]  ;;  %v911_v24 = vld [vmem:[%s1839_s19 + $0x58] sm:$0xff]  ;;  %vm806_vm4 = vcmask 1043456  }
  0x64   : > { %s2561_s2 = sld [smem:[#allocation56_spill]]  ;;  %s2562_s3 = sld [smem:[#allocation57_spill]]  ;;  %1478 = vmatprep.subr.bf16.mxu1 %v1681_v0  ;;  %v1488_v22 = vpack.c.bf16 %v909_v21, %v908_v20  ;;  %v1491_v25 = vpack.c.bf16 %v911_v24, %v910_v23  ;;  %v912_v26 = vld [vmem:[%s1839_s19 + $0x60] sm:$0xff]  ;;  %v913_v27 = vld [vmem:[%s1839_s19 + $0x68] sm:$0xff]  ;;  %vm808_vm5 = vcmask 1044480   ;;  %vm810_vm6 = vcmask 1045504  }
  0x65   : > { %s339_s17 = sld [smem:[#allocation3 + %s338_s8]]  ;;  %s2486_s11 = sadd.s32 5, %s1847_s28  ;;  %v1494_v28 = vpack.c.bf16 %v913_v27, %v912_v26  ;;  %vm812_vm7 = vcmask 1046528   ;;  %vm825_vm8 = vcmask 261120  }
  0x66   : > { %s1874_s4 = sld [smem:[#allocation3 + %s2483_s9]]  ;;  %p332_p9 = scmp.gt.s32.totalorder %s1851_s20, 0 }
  0x67   : > { %p326_p2 = scmp.gt.s32.totalorder %s325_s30, 0  ;;  %p1167_p8 = scmp.lt.s32.totalorder %s325_s30, 63  ;;  %1480 = vmatpush3.bf16.msra.mxu1 %v1479_v13 }
  0x68   : > { %p346_p4 = scmp.gt.s32.totalorder %s1851_s20, 1  ;;  %p360_p1 = scmp.gt.s32.totalorder %s1851_s20, 2  ;;  %1481 = vmatprep.subr.bf16.mxu1 %v1681_v0 }
  0x69   : > { %s2713_s30 = smov (!%p326_p2, %s325_s30), 0  ;;  %p374_p3 = scmp.gt.s32.totalorder %s1851_s20, 3 }
  0x6a   : > { %s1865_s27 = scalar_lea.vmem %s2561_s2, %s1335_s24  ;;  %s316_s16 = scalar_lea.vmem %s2562_s3, %s1336_s23 }
  0x6b   : > { %v814_v2 = vld [vmem:[%s316_s16] sm:$0xff]  ;;  %v815_v3 = vld [vmem:[%s316_s16 + $0x8] sm:$0xff]  ;;  %v816_v4 = vld [vmem:[%s316_s16 + $0x10] sm:$0xff]  ;;  %s1878_s24 = scalar_select %p332_p9, 1, 0  ;;  %1483 = vmatpush3.bf16.msra.mxu1 %v1482_v16 }
  0x6c   : > { %v1470_v5 = vpack.c.bf16 %v815_v3, %v814_v2  ;;  %v817_v6 = vld [vmem:[%s316_s16 + $0x18] sm:$0xff]  ;;  %s2715_s30 = smov (!%p1167_p8, %s2713_s30), 63  ;;  %p340_p6 = scmp.gt.s32.totalorder %s339_s17, 0  ;;  %1484 = vmatprep.subr.bf16.mxu1 %v1681_v0 }
  0x6d   : > { %v1473_v7 = vpack.c.bf16 %v817_v6, %v816_v4  ;;  %p1172_p10 = scmp.lt.s32.totalorder %s339_s17, 63  ;;  %p354_p12 = scmp.gt.s32.totalorder %s1874_s4, 0 }
  0x6e   : > { %1471 = vmatpush3.bf16.msra.mxu0 %v1470_v5  ;;  %s2717_s17 = smov (!%p340_p6, %s339_s17), 0  ;;  %p1177_p0 = scmp.lt.s32.totalorder %s1874_s4, 63 }
  0x6f   : > { %1472 = vmatprep.subr.bf16.mxu0 %v1681_v0  ;;  %s1886_s26 = scalar_select %p346_p4, 1, 0  ;;  %1486 = vmatpush3.bf16.msra.mxu1 %v1485_v19 }
  0x70   : > { %s2719_s17 = smov (!%p1172_p10, %s2717_s17), 63  ;;  %s2721_s4 = smov (!%p354_p12, %s1874_s4), 0  ;;  %1487 = vmatprep.subr.bf16.mxu1 %v1681_v0 }
  0x71   : > { %s2488_s16 = sadd.s32 3, %s1847_s28  ;;  %s2723_s4 = smov (!%p1177_p0, %s2721_s4), 63 }
  0x72   : > { %1474 = vmatpush3.bf16.msra.mxu0 %v1473_v7  ;;  %2563 = sst [smem:[#allocation23_spill]] %s2723_s4  ;;  %s2487_s2 = sadd.s32 4, %s1847_s28 }
  0x73   : > { %s1900_s23 = scalar_select %p360_p1, 1, 0  ;;  %1489 = vmatpush3.bf16.msra.mxu1 %v1488_v22 }
  0x74   : > { %s367_s29 = sld [smem:[#allocation3 + %s2488_s16]]  ;;  %s2492_s20 = sadd.s32 6, %s1847_s28  ;;  %1490 = vmatprep.subr.bf16.mxu1 %v1681_v0 }
  0x75   : > { %2564 = sst [smem:[#allocation24_spill]] %s1900_s23  ;;  %s2567_s12 = sadd.s32 7, %s1847_s28 }
  0x76   : > { %s1910_s0 = sld [smem:[#allocation4 + %s338_s8]]  ;;  %s2568_s15 = sadd.s32 2, %s1847_s28 }
  0x77   : > { %s1913_s3 = scalar_select %p374_p3, 1, 0  ;;  %1492 = vmatpush3.bf16.msra.mxu1 %v1491_v25 }
  0x78   : > { %s382_s18 = sld [smem:[#allocation3 + %s2487_s2]]  ;;  %s452_s6 = sadd.s32 9, %s1847_s28  ;;  %1493 = vmatprep.subr.bf16.mxu1 %v1681_v0 }
  0x79   : > { %2565 = sst [smem:[#allocation25_spill]] %s1913_s3  ;;  %s466_s14 = sadd.s32 10, %s1847_s28 }
  0x7a   : > { %s396_s25 = sld [smem:[#allocation3 + %s2486_s11]]  ;;  %p368_p5 = scmp.gt.s32.totalorder %s367_s29, 0 }
  0x7b   : > { %p1182_p11 = scmp.lt.s32.totalorder %s367_s29, 63  ;;  %s410_s16 = sld [smem:[#allocation3 + %s2492_s20]]  ;;  %1495 = vmatpush3.bf16.msra.mxu1 %v1494_v28 }
  0x7c   : > { %s2725_s29 = smov (!%p368_p5, %s367_s29), 0  ;;  %p389_p13 = scmp.gt.s32.totalorder %s1910_s0, 0  ;;  %1496 = vmatprep.subr.bf16.mxu1 %v1681_v0 }
  0x7d   : > { %p403_p7 = scmp.gt.s32.totalorder %s1910_s0, 1  ;;  %s2727_s29 = smov (!%p1182_p11, %s2725_s29), 63 }
  0x7e   : > { %2566 = sst [smem:[#allocation26_spill]] %s2727_s29  ;;  %p383_p2 = scmp.gt.s32.totalorder %s382_s18, 0 }
  0x7f   : > { %p1187_p8 = scmp.lt.s32.totalorder %s382_s18, 63  ;;  %p417_p6 = scmp.gt.s32.totalorder %s1910_s0, 2 }
  0x80   : > { %p397_p9 = scmp.gt.s32.totalorder %s396_s25, 0  ;;  %s2729_s18 = smov (!%p383_p2, %s382_s18), 0 }
  0x81   : > { %s1929_s9 = scalar_select %p389_p13, 1, 0 }
  0x82   : > { %s2731_s18 = smov (!%p1187_p8, %s2729_s18), 63  ;;  %p1192_p4 = scmp.lt.s32.totalorder %s396_s25, 63 }
  0x83   : > { %s2733_s25 = smov (!%p397_p9, %s396_s25), 0  ;;  %s424_s11 = sld [smem:[#allocation3 + %s2567_s12]] }
  0x84   : > { %s1940_s8 = scalar_select %p403_p7, 1, 0 }
  0x85   : > { %s2735_s25 = smov (!%p1192_p4, %s2733_s25), 63  ;;  %p411_p10 = scmp.gt.s32.totalorder %s410_s16, 0 }
  0x86   : > { %p1197_p12 = scmp.lt.s32.totalorder %s410_s16, 63  ;;  %p431_p0 = scmp.gt.s32.totalorder %s1910_s0, 3 }
  0x87   : > { %s1950_s2 = scalar_select %p417_p6, 1, 0 }
  0x88   : > { %s2737_s16 = smov (!%p411_p10, %s410_s16), 0  ;;  %s1960_s12 = sld [smem:[#allocation4 + %s2568_s15]] }
  0x89   : > { %s2739_s16 = smov (!%p1197_p12, %s2737_s16), 63  ;;  %p425_p1 = scmp.gt.s32.totalorder %s424_s11, 0 }
  0x8a   : > { %p1202_p3 = scmp.lt.s32.totalorder %s424_s11, 63  ;;  %s438_s20 = sadd.s32 8, %s1847_s28 }
  0x8b   : > { %s2741_s11 = smov (!%p425_p1, %s424_s11), 0  ;;  %s439_s7 = sld [smem:[#allocation3 + %s438_s20]] }
  0x8c   : > { %s1962_s22 = scalar_select %p431_p0, 1, 0 }
  0x8d   : > { %s2743_s11 = smov (!%p1202_p3, %s2741_s11), 63  ;;  %s453_s10 = sld [smem:[#allocation3 + %s452_s6]] }
  0x8e   : > { %2569 = sst [smem:[#allocation27_spill]] %s1962_s22  ;;  %p446_p5 = scmp.gt.s32.totalorder %s1960_s12, 0 }
  0x8f   : > { %2570 = sst [smem:[#allocation28_spill]] %s2743_s11  ;;  %p460_p11 = scmp.gt.s32.totalorder %s1960_s12, 1 }
  0x90   : > { %s1973_s15 = scalar_select %p446_p5, 1, 0 }
  0x91   : > { %s1975_s21 = scalar_select %p460_p11, 1, 0 }
  0x92   : > { %p440_p13 = scmp.gt.s32.totalorder %s439_s7, 0  ;;  %p1207_p7 = scmp.lt.s32.totalorder %s439_s7, 63 }
  0x93   : > { %2571 = sst [smem:[#allocation29_spill]] %s1975_s21  ;;  %p454_p2 = scmp.gt.s32.totalorder %s453_s10, 0 }
  0x94   : > { %s467_s20 = sld [smem:[#allocation3 + %s466_s14]]  ;;  %s2745_s7 = smov (!%p440_p13, %s439_s7), 0 }
  0x95   : > { %p1212_p8 = scmp.lt.s32.totalorder %s453_s10, 63  ;;  %s2747_s7 = smov (!%p1207_p7, %s2745_s7), 63 }
  0x96   : > { %s2749_s10 = smov (!%p454_p2, %s453_s10), 0  ;;  %p474_p9 = scmp.gt.s32.totalorder %s1960_s12, 2 }
  0x97   : > { %s2751_s10 = smov (!%p1212_p8, %s2749_s10), 63  ;;  %s480_s1 = sadd.s32 11, %s1847_s28 }
  0x98   : > { %s1990_s0 = scalar_select %p474_p9, 1, 0 }
  0x99   : > { %s481_s6 = sld [smem:[#allocation3 + %s480_s1]]  ;;  %p488_p10 = scmp.gt.s32.totalorder %s1960_s12, 3 }
  0x9a   : > { %p468_p4 = scmp.gt.s32.totalorder %s467_s20, 0  ;;  %p1217_p6 = scmp.lt.s32.totalorder %s467_s20, 63 }
  0x9b   : > { %2572 = sst [smem:[#allocation30_spill]] %s1990_s0  ;;  %s2573_s29 = sadd.s32 3, %s1847_s28 }
  0x9c   : > { %s2753_s20 = smov (!%p468_p4, %s467_s20), 0  ;;  %s2000_s3 = sld [smem:[#allocation4 + %s2573_s29]] }
  0x9d   : > { %s2755_s20 = smov (!%p1217_p6, %s2753_s20), 63  ;;  %s495_s14 = sadd.s32 12, %s1847_s28 }
  0x9e   : > { %s2003_s22 = scalar_select %p488_p10, 1, 0 }
  0x9f   : > { %s496_s11 = sld [smem:[#allocation3 + %s495_s14]]  ;;  %s509_s4 = sadd.s32 13, %s1847_s28 }
  0xa0   : > { %2574 = sst [smem:[#allocation31_spill]] %s2003_s22  ;;  %p482_p12 = scmp.gt.s32.totalorder %s481_s6, 0 }
  0xa1   : > { %s510_s21 = sld [smem:[#allocation3 + %s509_s4]]  ;;  %p1222_p0 = scmp.lt.s32.totalorder %s481_s6, 63 }
  0xa2   : > { %s523_s1 = sadd.s32 14, %s1847_s28  ;;  %s537_s5 = sadd.s32 15, %s1847_s28 }
  0xa3   : > { %s2757_s6 = smov (!%p482_p12, %s481_s6), 0  ;;  %p503_p1 = scmp.gt.s32.totalorder %s2000_s3, 0 }
  0xa4   : > { %p517_p3 = scmp.gt.s32.totalorder %s2000_s3, 1  ;;  %s2759_s6 = smov (!%p1222_p0, %s2757_s6), 63 }
  0xa5   : > { %2575 = sst [smem:[#allocation32_spill]] %s2759_s6  ;;  %p497_p5 = scmp.gt.s32.totalorder %s496_s11, 0 }
  0xa6   : > { %p1227_p11 = scmp.lt.s32.totalorder %s496_s11, 63  ;;  %s524_s23 = sld [smem:[#allocation3 + %s523_s1]] }
  0xa7   : > { %p511_p13 = scmp.gt.s32.totalorder %s510_s21, 0  ;;  %s2761_s11 = smov (!%p497_p5, %s496_s11), 0 }
  0xa8   : > { %s2015_s4 = scalar_select %p503_p1, 1, 0 }
  0xa9   : > { %s2763_s11 = smov (!%p1227_p11, %s2761_s11), 63  ;;  %p1232_p7 = scmp.lt.s32.totalorder %s510_s21, 63 }
  0xaa   : > { %2576 = sst [smem:[#allocation33_spill]] %s2015_s4  ;;  %s2765_s21 = smov (!%p511_p13, %s510_s21), 0 }
  0xab   : > { %2577 = sst [smem:[#allocation34_spill]] %s2763_s11  ;;  %s2767_s21 = smov (!%p1232_p7, %s2765_s21), 63 }
  0xac   : > { %s2024_s13 = scalar_select %p517_p3, 1, 0 }
  0xad   : > { %2579 = sst [smem:[#allocation36_spill]] %s2767_s21  ;;  %p531_p2 = scmp.gt.s32.totalorder %s2000_s3, 2 }
  0xae   : > { %2578 = sst [smem:[#allocation35_spill]] %s2024_s13  ;;  %p525_p8 = scmp.gt.s32.totalorder %s524_s23, 0 }
  0xaf   : > { %s538_s22 = sld [smem:[#allocation3 + %s537_s5]]  ;;  %p1237_p9 = scmp.lt.s32.totalorder %s524_s23, 63 }
  0xb0   : > { %s2036_s1 = scalar_select %p531_p2, 1, 0 }
  0xb1   : > { %s2769_s23 = smov (!%p525_p8, %s524_s23), 0  ;;  %p545_p4 = scmp.gt.s32.totalorder %s2000_s3, 3 }
  0xb2   : > { %2580 = sst [smem:[#allocation37_spill]] %s2036_s1  ;;  %s2771_s23 = smov (!%p1237_p9, %s2769_s23), 63 }
  0xb3   : > { %2581 = sst [smem:[#allocation38_spill]] %s2771_s23  ;;  %s2582_s12 = sadd.s32 4, %s1847_s28 }
  0xb4   : > { %s2049_s14 = sld [smem:[#allocation4 + %s2582_s12]]  ;;  %s552_s12 = sadd.s32 16, %s1847_s28 }
  0xb5   : > { %p539_p6 = scmp.gt.s32.totalorder %s538_s22, 0  ;;  %p1242_p10 = scmp.lt.s32.totalorder %s538_s22, 63 }
  0xb6   : > { %s2054_s3 = scalar_select %p545_p4, 1, 0 }
  0xb7   : > { %s2773_s22 = smov (!%p539_p6, %s538_s22), 0  ;;  %s553_s1 = sld [smem:[#allocation3 + %s552_s12]] }
  0xb8   : > { %2583 = sst [smem:[#allocation39_spill]] %s2054_s3  ;;  %s2775_s22 = smov (!%p1242_p10, %s2773_s22), 63 }
  0xb9   : > { %2584 = sst [smem:[#allocation40_spill]] %s2775_s22  ;;  %s566_s23 = sadd.s32 17, %s1847_s28 }
  0xba   : > { %p560_p12 = scmp.gt.s32.totalorder %s2049_s14, 0  ;;  %s2067_s6 = sld [smem:[#allocation3 + %s566_s23]] }
  0xbb   : > { %p574_p0 = scmp.gt.s32.totalorder %s2049_s14, 1  ;;  %s580_s23 = sadd.s32 18, %s1847_s28 }
  0xbc   : > { %s2070_s13 = scalar_select %p560_p12, 1, 0 }
  0xbd   : > { %s2075_s29 = scalar_select %p574_p0, 1, 0 }
  0xbe   : > { %2585 = sst [smem:[#allocation41_spill]] %s2070_s13  ;;  %p554_p1 = scmp.gt.s32.totalorder %s553_s1, 0 }
  0xbf   : > { %2586 = sst [smem:[#allocation42_spill]] %s2075_s29  ;;  %p1247_p3 = scmp.lt.s32.totalorder %s553_s1, 63 }
  0xc0   : > { %s581_s3 = sld [smem:[#allocation3 + %s580_s23]]  ;;  %s2777_s1 = smov (!%p554_p1, %s553_s1), 0 }
  0xc1   : > { %p568_p5 = scmp.gt.s32.totalorder %s2067_s6, 0  ;;  %p1252_p11 = scmp.lt.s32.totalorder %s2067_s6, 63 }
  0xc2   : > { %s2779_s1 = smov (!%p1247_p3, %s2777_s1), 63  ;;  %p588_p13 = scmp.gt.s32.totalorder %s2049_s14, 2 }
  0xc3   : > { %2587 = sst [smem:[#allocation43_spill]] %s2779_s1  ;;  %s2781_s6 = smov (!%p568_p5, %s2067_s6), 0 }
  0xc4   : > { %s2783_s6 = smov (!%p1252_p11, %s2781_s6), 63  ;;  %s594_s12 = sadd.s32 19, %s1847_s28 }
  0xc5   : > { %2588 = sst [smem:[#allocation44_spill]] %s2783_s6  ;;  %p602_p8 = scmp.gt.s32.totalorder %s2049_s14, 3 }
  0xc6   : > { %p582_p7 = scmp.gt.s32.totalorder %s581_s3, 0  ;;  %p1257_p2 = scmp.lt.s32.totalorder %s581_s3, 63 }
  0xc7   : > { %s2098_s19 = scalar_select %p588_p13, 1, 0 }
  0xc8   : > { %s2785_s3 = smov (!%p582_p7, %s581_s3), 0  ;;  %s595_s22 = sld [smem:[#allocation3 + %s594_s12]] }
  0xc9   : > { %2589 = sst [smem:[#allocation45_spill]] %s2098_s19  ;;  %s2787_s3 = smov (!%p1257_p2, %s2785_s3), 63 }
  0xca   : > { %2590 = sst [smem:[#allocation46_spill]] %s2787_s3  ;;  %s2591_s13 = sadd.s32 5, %s1847_s28 }
  0xcb   : > { %s2108_s1 = sld [smem:[#allocation4 + %s2591_s13]]  ;;  %s609_s5 = sadd.s32 20, %s1847_s28 }
  0xcc   : > { %s2111_s6 = scalar_select %p602_p8, 1, 0 }
  0xcd   : > { %s610_s21 = sld [smem:[#allocation3 + %s609_s5]]  ;;  %s623_s4 = sadd.s32 21, %s1847_s28 }
  0xce   : > { %2592 = sst [smem:[#allocation47_spill]] %s2111_s6  ;;  %p596_p9 = scmp.gt.s32.totalorder %s595_s22, 0 }
  0xcf   : > { %s624_s0 = sld [smem:[#allocation3 + %s623_s4]]  ;;  %p1262_p4 = scmp.lt.s32.totalorder %s595_s22, 63 }
  0xd0   : > { %s637_s12 = sadd.s32 22, %s1847_s28  ;;  %s651_s23 = sadd.s32 23, %s1847_s28 }
  0xd1   : > { %s2789_s22 = smov (!%p596_p9, %s595_s22), 0  ;;  %p617_p6 = scmp.gt.s32.totalorder %s2108_s1, 0 }
  0xd2   : > { %p631_p10 = scmp.gt.s32.totalorder %s2108_s1, 1  ;;  %s2791_s22 = smov (!%p1262_p4, %s2789_s22), 63 }
  0xd3   : > { %2593 = sst [smem:[#allocation48_spill]] %s2791_s22  ;;  %p611_p12 = scmp.gt.s32.totalorder %s610_s21, 0 }
  0xd4   : > { %p1267_p0 = scmp.lt.s32.totalorder %s610_s21, 63  ;;  %s638_s11 = sld [smem:[#allocation3 + %s637_s12]] }
  0xd5   : > { %p625_p1 = scmp.gt.s32.totalorder %s624_s0, 0  ;;  %s2793_s21 = smov (!%p611_p12, %s610_s21), 0 }
  0xd6   : > { %s2123_s4 = scalar_select %p617_p6, 1, 0 }
  0xd7   : > { %s2795_s21 = smov (!%p1267_p0, %s2793_s21), 63  ;;  %p1272_p3 = scmp.lt.s32.totalorder %s624_s0, 63 }
  0xd8   : > { %s2797_s0 = smov (!%p625_p1, %s624_s0), 0  ;;  %p645_p5 = scmp.gt.s32.totalorder %s2108_s1, 2 }
  0xd9   : > { %s2132_s29 = scalar_select %p631_p10, 1, 0 }
  0xda   : > { %s2799_s0 = smov (!%p1272_p3, %s2797_s0), 63  ;;  %s652_s22 = sld [smem:[#allocation3 + %s651_s23]] }
  0xdb   : > { %2594 = sst [smem:[#allocation49_spill]] %s2132_s29  ;;  %p639_p11 = scmp.gt.s32.totalorder %s638_s11, 0 }
  0xdc   : > { %2595 = sst [smem:[#allocation50_spill]] %s2799_s0  ;;  %p1277_p13 = scmp.lt.s32.totalorder %s638_s11, 63 }
  0xdd   : > { %s2140_s14 = scalar_select %p645_p5, 1, 0 }
  0xde   : > { %s2801_s11 = smov (!%p639_p11, %s638_s11), 0  ;;  %p659_p7 = scmp.gt.s32.totalorder %s2108_s1, 3 }
  0xdf   : > { %2596 = sst [smem:[#allocation51_spill]] %s2140_s14  ;;  %s2803_s11 = smov (!%p1277_p13, %s2801_s11), 63 }
  0xe0   : > { %2597 = sst [smem:[#allocation52_spill]] %s2803_s11  ;;  %p653_p2 = scmp.gt.s32.totalorder %s652_s22, 0 }
  0xe1   : > { %p1282_p8 = scmp.lt.s32.totalorder %s652_s22, 63  ;;  %s2598_s5 = sadd.s32 6, %s1847_s28 }
  0xe2   : > { %s2150_s23 = sld [smem:[#allocation4 + %s2598_s5]]  ;;  %s2805_s22 = smov (!%p653_p2, %s652_s22), 0 }
  0xe3   : > { %s2152_s6 = scalar_select %p659_p7, 1, 0 }
  0xe4   : > { %s2807_s22 = smov (!%p1282_p8, %s2805_s22), 63  ;;  %s666_s12 = sadd.s32 24, %s1847_s28 }
  0xe5   : > { %2599 = sst [smem:[#allocation53_spill]] %s2152_s6  ;;  %s680_s3 = sadd.s32 25, %s1847_s28 }
  0xe6   : > { %2600 = sst [smem:[#allocation54_spill]] %s2807_s22  ;;  %s694_s0 = sadd.s32 26, %s1847_s28 }
  0xe7   : > { %s667_s19 = sld [smem:[#allocation3 + %s666_s12]]  ;;  %s708_s14 = sadd.s32 27, %s1847_s28 }
  0xe8   : > { %p674_p9 = scmp.gt.s32.totalorder %s2150_s23, 0  ;;  %s681_s13 = sld [smem:[#allocation3 + %s680_s3]] }
  0xe9   : > { %p688_p4 = scmp.gt.s32.totalorder %s2150_s23, 1  ;;  %s695_s3 = sld [smem:[#allocation3 + %s694_s0]] }
  0xea   : > { %s2163_s5 = scalar_select %p674_p9, 1, 0 }
  0xeb   : > { %s2165_s11 = scalar_select %p688_p4, 1, 0 }
  0xec   : > { %p702_p1 = scmp.gt.s32.totalorder %s2150_s23, 2  ;;  %s2602_s12 = scalar_lea.vmem %s1865_s27, %s2731_s18 }
  0xed   : > { %2601 = sst [smem:[#allocation55_spill]] %s2165_s11  ;;  %p668_p6 = scmp.gt.s32.totalorder %s667_s19, 0  ;;  %v388_v29 = vld [vmem:[%s2602_s12] sm:$0x1] }
  0xee   : > { %p1287_p10 = scmp.lt.s32.totalorder %s667_s19, 63  ;;  %p682_p12 = scmp.gt.s32.totalorder %s681_s13, 0 }
  0xef   : > { %s2809_s19 = smov (!%p668_p6, %s667_s19), 0  ;;  %p1292_p0 = scmp.lt.s32.totalorder %s681_s13, 63 }
  0xf0   : > { %s2811_s19 = smov (!%p1287_p10, %s2809_s19), 63  ;;  %s2813_s13 = smov (!%p682_p12, %s681_s13), 0 }
  0xf1   : > { %s2815_s13 = smov (!%p1292_p0, %s2813_s13), 63  ;;  %p696_p3 = scmp.gt.s32.totalorder %s695_s3, 0 }
  0xf2   : > { %p1297_p5 = scmp.lt.s32.totalorder %s695_s3, 63  ;;  %s2603_s29 = scvt.s32.f32 %s1929_s9 }
  0xf3   : > { %s2604_s6 = scalar_lea.vmem %s1865_s27, %s2735_s25  ;;  %s2605_s1 = scvt.s32.f32 %s1940_s8 }
  0xf4   : > { %v392_v30 = vstv %s2603_s29  ;;  %v402_v31 = vld [vmem:[%s2604_s6] sm:$0x1]  ;;  %s2817_s3 = smov (!%p696_p3, %s695_s3), 0  ;;  %s2606_s22 = sld [smem:[#allocation29_spill]] }
  0xf5   : > { %v406_v32 = vstv %s2605_s1  ;;  %s2190_s11 = scalar_select %p702_p1, 1, 0  ;;  %v393_v37 = vmul.f32 %v392_v30, %v388_v29 }
  0xf6   : > { %s2608_s0 = scalar_lea.vmem %s1865_s27, %s2715_s30  ;;  %s2609_s18 = scvt.s32.f32 %s1878_s24  ;;  %v407_v38 = vmul.f32 %v406_v32, %v402_v31 }
  0xf7   : > { %2607 = sst [smem:[#allocation29_spill]] %s2190_s11  ;;  %v331_v33 = vld [vmem:[%s2608_s0] sm:$0x1]  ;;  %s2819_s3 = smov (!%p1297_p5, %s2817_s3), 63 }
  0xf8   : > { %v335_v34 = vstv %s2609_s18  ;;  %s2610_s9 = scalar_lea.vmem %s1865_s27, %s2719_s17  ;;  %s2611_s25 = scvt.s32.f32 %s1886_s26  ;;  %v408_v49 = vadd.f32 %v407_v38, %v393_v37 }
  0xf9   : > { %v345_v35 = vld [vmem:[%s2610_s9] sm:$0x1]  ;;  %s2612_s8 = sld [smem:[#allocation24_spill]]  ;;  %s2613_s6 = scalar_lea.vmem %s1865_s27, %s2739_s16  ;;  %v336_v45 = vmul.f32 %v335_v34, %v331_v33 }
  0xfa   : > { %v349_v36 = vstv %s2611_s25  ;;  %v416_v39 = vld [vmem:[%s2613_s6] sm:$0x1]  ;;  %s2614_s30 = scvt.s32.f32 %s1950_s2  ;;  %s2615_s29 = sld [smem:[#allocation23_spill]] }
  0xfb   : > { %s2210_s1 = sld [smem:[#allocation3 + %s708_s14]]  ;;  %s2616_s12 = scalar_lea.vmem %s1865_s27, %s2747_s7  ;;  %v350_v46 = vmul.f32 %v349_v36, %v345_v35 }
  0xfc   : > { %v420_v40 = vstv %s2614_s30  ;;  %v445_v41 = vld [vmem:[%s2616_s12] sm:$0x1]  ;;  %s2617_s17 = scvt.s32.f32 %s1973_s15  ;;  %s2618_s0 = scalar_lea.vmem %s1865_s27, %s2751_s10 }
  0xfd   : > { %v459_v43 = vld [vmem:[%s2618_s0] sm:$0x1]  ;;  %s2619_s26 = scvt.s32.f32 %s2606_s22  ;;  %s2620_s18 = sld [smem:[#allocation28_spill]]  ;;  %v421_v50 = vmul.f32 %v420_v40, %v416_v39  ;;  %v351_v58 = vadd.f32 %v350_v46, %v336_v45 }
  0xfe   : > { %v449_v42 = vstv %s2617_s17  ;;  %s2621_s9 = sld [smem:[#allocation27_spill]]  ;;  %p716_p11 = scmp.gt.s32.totalorder %s2150_s23, 3 }
  0xff   : > { %v463_v44 = vstv %s2619_s26  ;;  %s2622_s2 = sadd.s32 7, %s1847_s28  ;;  %s2623_s14 = sld [smem:[#allocation30_spill]]  ;;  %v450_v51 = vmul.f32 %v449_v42, %v445_v41  ;;  %v422_v1 = vadd.f32 %v421_v50, %v408_v49 }
 0x100   : > { %s2227_s25 = sld [smem:[#allocation4 + %s2622_s2]]  ;;  %s723_s7 = sadd.s32 28, %s1847_s28  ;;  %v464_v52 = vmul.f32 %v463_v44, %v459_v43 }
 0x101   : > { %s2624_s15 = scvt.s32.f32 %s2612_s8  ;;  %s2625_s10 = sld [smem:[#allocation25_spill]] }
 0x102   : > { %s2232_s22 = scalar_select %p716_p11, 1, 0  ;;  %v465_v3 = vadd.f32 %v464_v52, %v450_v51 }
 0x103   : > { %v363_v47 = vstv %s2624_s15  ;;  %s2626_s6 = scalar_lea.vmem %s1865_s27, %s2615_s29  ;;  %s2627_s23 = sld [smem:[#allocation34_spill]] }
 0x104   : > { %v359_v48 = vld [vmem:[%s2626_s6] sm:$0x1]  ;;  %s2628_s30 = sld [smem:[#allocation33_spill]]  ;;  %s2629_s12 = sld [smem:[#allocation36_spill]] }
 0x105   : > { %s2237_s17 = sld [smem:[#allocation3 + %s723_s7]]  ;;  %s737_s0 = sadd.s32 29, %s1847_s28  ;;  %v364_v59 = vmul.f32 %v363_v47, %v359_v48 }
 0x106   : > { %s2630_s8 = sld [smem:[#allocation35_spill]]  ;;  %s2631_s26 = scalar_lea.vmem %s1865_s27, %s2620_s18 }
 0x107   : > { %v430_v53 = vld [vmem:[%s2631_s26] sm:$0x1]  ;;  %s2632_s29 = scvt.s32.f32 %s2621_s9  ;;  %s2633_s2 = scalar_lea.vmem %s1865_s27, %s2755_s20  ;;  %v365_v11 = vadd.f32 %v364_v59, %v351_v58 }
 0x108   : > { %s2634_s15 = sld [smem:[#allocation26_spill]]  ;;  %v473_v55 = vld [vmem:[%s2633_s2] sm:$0x1]  ;;  %s2635_s6 = scvt.s32.f32 %s2623_s14 }
 0x109   : > { %v434_v54 = vstv %s2632_s29  ;;  %s718_s24 = scvt.s32.f32 %s2232_s22  ;;  %s2251_s16 = sld [smem:[#allocation3 + %s737_s0]] }
 0x10a   : > { %v477_v56 = vstv %s2635_s6  ;;  %s2636_s11 = scvt.s32.f32 %s2625_s10  ;;  %p710_p13 = scmp.gt.s32.totalorder %s2210_s1, 0  ;;  %v435_v2 = vmul.f32 %v434_v54, %v430_v53 }
 0x10b   : > { %p1302_p7 = scmp.lt.s32.totalorder %s2210_s1, 63  ;;  %s2637_s18 = scalar_lea.vmem %s1865_s27, %s2627_s23  ;;  %v478_v4 = vmul.f32 %v477_v56, %v473_v55 }
 0x10c   : > { %v377_v57 = vstv %s2636_s11  ;;  %v502_v60 = vld [vmem:[%s2637_s18] sm:$0x1]  ;;  %s2638_s20 = scvt.s32.f32 %s2628_s30  ;;  %s2639_s9 = sld [smem:[#allocation43_spill]]  ;;  %v2303_v17 = vadd.f32 %v435_v2, %v422_v1 }
 0x10d   : > { %s2640_s14 = scalar_lea.vmem %s1865_s27, %s2629_s12  ;;  %s2641_s7 = sld [smem:[#allocation41_spill]]  ;;  %v479_v18 = vadd.f32 %v478_v4, %v465_v3 }
 0x10e   : > { %v506_v61 = vstv %s2638_s20  ;;  %v516_v62 = vld [vmem:[%s2640_s14] sm:$0x1]  ;;  %s2642_s0 = scvt.s32.f32 %s2630_s8  ;;  %s2643_s11 = sld [smem:[#allocation44_spill]]  ;;  %v780_v43 = vrot.slane %v2303_v17, 7 }
 0x10f   : > { %s2644_s10 = sld [smem:[#allocation42_spill]]  ;;  %s751_s26 = sadd.s32 30, %s1847_s28  ;;  %v507_v5 = vmul.f32 %v506_v61, %v502_v60 }
 0x110   : > { %v520_v63 = vstv %s2642_s0  ;;  %s765_s29 = sadd.s32 31, %s1847_s28  ;;  %s2645_s2 = scalar_lea.vmem %s1865_s27, %s2634_s15 }
 0x111   : > { %v373_v0 = vld [vmem:[%s2645_s2] sm:$0x1]  ;;  %s2646_s23 = sld [smem:[#allocation32_spill]]  ;;  %s2647_s30 = sld [smem:[#allocation31_spill]]  ;;  %v521_v6 = vmul.f32 %v520_v63, %v516_v62 }
 0x112   : > { %s2648_s12 = sld [smem:[#allocation38_spill]]  ;;  %s2649_s8 = sld [smem:[#allocation37_spill]]  ;;  %v378_v12 = vmul.f32 %v377_v57, %v373_v0 }
 0x113   : > { %s711_s6 = scalar_select %p710_p13, %s2210_s1, 0  ;;  %v522_v26 = vadd.f32 %v521_v6, %v507_v5 }
 0x114   : > { %p731_p2 = scmp.gt.s32.totalorder %s2227_s25, 0  ;;  %p745_p8 = scmp.gt.s32.totalorder %s2227_s25, 1  ;;  %v379_v30 = vadd.f32 %v378_v12, %v365_v11 }
 0x115   : > { %s2650_s15 = scalar_lea.vmem %s1865_s27, %s2639_s9  ;;  %s2651_s18 = scvt.s32.f32 %s2641_s7 }
 0x116   : > { %v559_v7 = vld [vmem:[%s2650_s15] sm:$0x1]  ;;  %s2652_s20 = scalar_lea.vmem %s1865_s27, %s2643_s11  ;;  %s2653_s14 = scvt.s32.f32 %s2644_s10  ;;  %v801_v61 = vsel %vm800_vm1, %v379_v30, %v780_v43 }
 0x117   : > { %v563_v8 = vstv %s2651_s18  ;;  %v573_v9 = vld [vmem:[%s2652_s20] sm:$0x1]  ;;  %s2821_s6 = smov (!%p1302_p7, %s711_s6), 63  ;;  %s2654_s0 = sld [smem:[#allocation50_spill]] }
 0x118   : > { %v577_v10 = vstv %s2653_s14  ;;  %s2655_s9 = scalar_lea.vmem %s1865_s27, %s2646_s23  ;;  %s2656_s2 = sld [smem:[#allocation49_spill]]  ;;  %v564_v19 = vmul.f32 %v563_v8, %v559_v7  ;;  %v719_v7 = vstv %s718_s24 }
 0x119   : > { %v487_v13 = vld [vmem:[%s2655_s9] sm:$0x1]  ;;  %s2657_s7 = scvt.s32.f32 %s2647_s30  ;;  %s2658_s11 = scalar_lea.vmem %s1865_s27, %s2648_s12  ;;  %v578_v20 = vmul.f32 %v577_v10, %v573_v9 }
 0x11a   : > { %v530_v15 = vld [vmem:[%s2658_s11] sm:$0x1]  ;;  %s2659_s10 = scvt.s32.f32 %s2649_s8  ;;  %p725_p9 = scmp.gt.s32.totalorder %s2237_s17, 0 }
 0x11b   : > { %v491_v14 = vstv %s2657_s7  ;;  %s2660_s1 = sld [smem:[#allocation46_spill]]  ;;  %p1307_p4 = scmp.lt.s32.totalorder %s2237_s17, 63  ;;  %v579_v39 = vadd.f32 %v578_v20, %v564_v19 }
 0x11c   : > { %v534_v16 = vstv %s2659_s10  ;;  %s2661_s15 = sld [smem:[#allocation45_spill]]  ;;  %s714_s18 = scalar_lea.vmem %s1865_s27, %s2821_s6  ;;  %v492_v25 = vmul.f32 %v491_v14, %v487_v13 }
 0x11d   : > { %s2662_s23 = sld [smem:[#allocation40_spill]]  ;;  %p739_p6 = scmp.gt.s32.totalorder %s2251_s16, 0  ;;  %v535_v27 = vmul.f32 %v534_v16, %v530_v15  ;;  %v715_v6 = vld [vmem:[%s714_s18] sm:$0x1] }
 0x11e   : > { %s2663_s30 = sld [smem:[#allocation39_spill]]  ;;  %s2664_s12 = scalar_lea.vmem %s1865_s27, %s2795_s21  ;;  %v493_v44 = vadd.f32 %v492_v25, %v479_v18  ;;  %v720_v13 = vmul.f32 %v719_v7, %v715_v6 }
 0x11f   : > { %v616_v21 = vld [vmem:[%s2664_s12] sm:$0x1]  ;;  %s2665_s8 = scvt.s32.f32 %s2123_s4  ;;  %s2666_s20 = scalar_lea.vmem %s1865_s27, %s2654_s0  ;;  %v536_v45 = vadd.f32 %v535_v27, %v522_v26 }
 0x120   : > { %v630_v23 = vld [vmem:[%s2666_s20] sm:$0x1]  ;;  %s2667_s14 = scvt.s32.f32 %s2656_s2  ;;  %s2668_s7 = sld [smem:[#allocation55_spill]]  ;;  %v783_v60 = vrot.slane %v493_v44, 6 }
 0x121   : > { %v620_v22 = vstv %s2665_s8  ;;  %s726_s9 = scalar_select %p725_p9, %s2237_s17, 0 }
 0x122   : > { %v634_v24 = vstv %s2667_s14  ;;  %s2669_s11 = scalar_lea.vmem %s1865_s27, %s2660_s1  ;;  %s2670_s21 = scvt.s32.f32 %s2661_s15  ;;  %v621_v33 = vmul.f32 %v620_v22, %v616_v21  ;;  %v803_v14 = vsel %vm802_vm2, %v801_v61, %v783_v60 }
 0x123   : > { %v587_v28 = vld [vmem:[%s2669_s11] sm:$0x1]  ;;  %s2671_s4 = sld [smem:[#allocation52_spill]]  ;;  %s2672_s2 = sld [smem:[#allocation51_spill]]  ;;  %v635_v34 = vmul.f32 %v634_v24, %v630_v23 }
 0x124   : > { %v591_v29 = vstv %s2670_s21  ;;  %s2326_s0 = scalar_select %p731_p2, 1, 0 }
 0x125   : > { %s2673_s10 = scalar_lea.vmem %s1865_s27, %s2662_s23  ;;  %s2674_s12 = scvt.s32.f32 %s2663_s30  ;;  %v592_v40 = vmul.f32 %v591_v29, %v587_v28  ;;  %v636_v51 = vadd.f32 %v635_v34, %v621_v33 }
 0x126   : > { %v544_v31 = vld [vmem:[%s2673_s10] sm:$0x1]  ;;  %s2823_s9 = smov (!%p1307_p4, %s726_s9), 63  ;;  %s2675_s1 = scalar_lea.vmem %s1865_s27, %s2811_s19 }
 0x127   : > { %v548_v32 = vstv %s2674_s12  ;;  %v673_v35 = vld [vmem:[%s2675_s1] sm:$0x1]  ;;  %s2676_s15 = scvt.s32.f32 %s2163_s5  ;;  %s2677_s8 = sld [smem:[#allocation48_spill]]  ;;  %v593_v55 = vadd.f32 %v592_v40, %v579_v39 }
 0x128   : > { %s2678_s20 = scalar_lea.vmem %s1865_s27, %s2815_s13  ;;  %s2679_s14 = sld [smem:[#allocation47_spill]]  ;;  %v549_v46 = vmul.f32 %v548_v32, %v544_v31 }
 0x129   : > { %v677_v36 = vstv %s2676_s15  ;;  %v687_v37 = vld [vmem:[%s2678_s20] sm:$0x1]  ;;  %s2680_s23 = scvt.s32.f32 %s2668_s7  ;;  %s733_s30 = scvt.s32.f32 %s2326_s0 }
 0x12a   : > { %p1312_p10 = scmp.lt.s32.totalorder %s2251_s16, 63  ;;  %s2681_s17 = scalar_lea.vmem %s1865_s27, %s2671_s4  ;;  %v678_v49 = vmul.f32 %v677_v36, %v673_v35  ;;  %v550_v59 = vadd.f32 %v549_v46, %v536_v45 }
 0x12b   : > { %v691_v38 = vstv %s2680_s23  ;;  %v644_v41 = vld [vmem:[%s2681_s17] sm:$0x1]  ;;  %s2682_s19 = scvt.s32.f32 %s2672_s2  ;;  %s729_s5 = scalar_lea.vmem %s1865_s27, %s2823_s9  ;;  %v734_v1 = vstv %s733_s30 }
 0x12c   : > { %s2683_s13 = sld [smem:[#allocation29_spill]]  ;;  %s2684_s7 = sld [smem:[#allocation54_spill]]  ;;  %v692_v50 = vmul.f32 %v691_v38, %v687_v37  ;;  %v730_v0 = vld [vmem:[%s729_s5] sm:$0x1]  ;;  %v786_v11 = vrot.slane %v550_v59, 5 }
 0x12d   : > { %v648_v42 = vstv %s2682_s19  ;;  %s2358_s11 = sld [smem:[#allocation3 + %s751_s26]]  ;;  %s2685_s21 = scalar_lea.vmem %s1865_s27, %s2677_s8  ;;  %v735_v9 = vmul.f32 %v734_v1, %v730_v0 }
 0x12e   : > { %s2686_s4 = sld [smem:[#allocation53_spill]]  ;;  %v601_v47 = vld [vmem:[%s2685_s21] sm:$0x1]  ;;  %s2687_s2 = scvt.s32.f32 %s2679_s14  ;;  %v649_v52 = vmul.f32 %v648_v42, %v644_v41  ;;  %v693_v62 = vadd.f32 %v692_v50, %v678_v49  ;;  %v805_v20 = vsel %vm804_vm3, %v803_v14, %v786_v11 }
 0x12f   : > { %s740_s10 = scalar_select %p739_p6, %s2251_s16, 0 }
 0x130   : > { %v605_v48 = vstv %s2687_s2  ;;  %s746_s26 = scalar_select %p745_p8, 1, 0  ;;  %v650_v4 = vadd.f32 %v649_v52, %v636_v51 }
 0x131   : > { %s2688_s12 = scalar_lea.vmem %s1865_s27, %s2819_s3  ;;  %s2825_s10 = smov (!%p1312_p10, %s740_s10), 63  ;;  %v606_v56 = vmul.f32 %v605_v48, %v601_v47 }
 0x132   : > { %v701_v53 = vld [vmem:[%s2688_s12] sm:$0x1]  ;;  %s2689_s1 = scvt.s32.f32 %s2683_s13  ;;  %s2690_s15 = scalar_lea.vmem %s1865_s27, %s2684_s7 }
 0x133   : > { %v658_v57 = vld [vmem:[%s2690_s15] sm:$0x1]  ;;  %s747_s20 = scvt.s32.f32 %s746_s26  ;;  %p759_p12 = scmp.gt.s32.totalorder %s2227_s25, 2  ;;  %v607_v8 = vadd.f32 %v606_v56, %v593_v55 }
 0x134   : > { %v705_v54 = vstv %s2689_s1  ;;  %s2691_s8 = scvt.s32.f32 %s2686_s4  ;;  %s743_s3 = scalar_lea.vmem %s1865_s27, %s2825_s10 }
 0x135   : > { %s2387_s16 = sld [smem:[#allocation3 + %s765_s29]]  ;;  %v706_v63 = vmul.f32 %v705_v54, %v701_v53  ;;  %v744_v2 = vld [vmem:[%s743_s3] sm:$0x1]  ;;  %v748_v3 = vstv %s747_s20  ;;  %p753_p0 = scmp.gt.s32.totalorder %s2358_s11, 0  ;;  %v789_v17 = vrot.slane %v607_v8, 4 }
 0x136   : > { %v662_v58 = vstv %s2691_s8  ;;  %p1317_p1 = scmp.lt.s32.totalorder %s2358_s11, 63  ;;  %v749_v10 = vmul.f32 %v748_v3, %v744_v2  ;;  %p773_p3 = scmp.gt.s32.totalorder %s2227_s25, 3 }
 0x137   : > { %v663_v5 = vmul.f32 %v662_v58, %v658_v57  ;;  %s760_s29 = scalar_select %p759_p12, 1, 0  ;;  %v707_v12 = vadd.f32 %v706_v63, %v693_v62  ;;  %v807_v24 = vsel %vm806_vm4, %v805_v20, %v789_v17 }
 0x138   : > { %s754_s9 = scalar_select %p753_p0, %s2358_s11, 0  ;;  %v750_v18 = vadd.f32 %v749_v10, %v735_v9 }
 0x139   : > { %s761_s0 = scvt.s32.f32 %s760_s29  ;;  %v664_v15 = vadd.f32 %v663_v5, %v650_v4  ;;  %v721_v21 = vadd.f32 %v720_v13, %v707_v12  ;;  %s2692_s18 = sld [smem:[#allocation21_spill]] }
 0x13a   : > { %s2827_s9 = smov (!%p1317_p1, %s754_s9), 63  ;;  %s2693_s23 = sld [smem:[#allocation22_spill]] }
 0x13b   : > { %v762_v16 = vstv %s761_s0  ;;  %p767_p5 = scmp.gt.s32.totalorder %s2387_s16, 0  ;;  %p1322_p11 = scmp.lt.s32.totalorder %s2387_s16, 63  ;;  %v792_v23 = vrot.slane %v664_v15, 3  ;;  %v795_v28 = vrot.slane %v721_v21, 2 }
 0x13c   : > { %s757_s24 = scalar_lea.vmem %s1865_s27, %s2827_s9  ;;  %s2694_s25 = sld [smem:[#allocation20_spill]] }
 0x13d   : > { %v758_v19 = vld [vmem:[%s757_s24] sm:$0x1]  ;;  %s2829_s16 = smov (!%p767_p5, %s2387_s16), 0  ;;  %v809_v30 = vsel %vm808_vm5, %v807_v24, %v792_v23  ;;  %s2695_s17 = sld [smem:[#allocation59_spill]] }
 0x13e   : > { %v763_v22 = vmul.f32 %v762_v16, %v758_v19  ;;  %s774_s22 = scalar_select %p773_p3, 1, 0  ;;  %v811_v32 = vsel %vm810_vm6, %v809_v30, %v795_v28 }
 0x13f   : > { %s2831_s16 = smov (!%p1322_p11, %s2829_s16), 63  ;;  %v914_v35 = vld [vmem:[%s2692_s18 + $0x70] sm:$0xff]  ;;  %v915_v36 = vld [vmem:[%s2692_s18 + $0x78] sm:$0xff]  ;;  %s2696_s5 = sld [smem:[#allocation18_spill]] }
 0x140   : > { %s775_s6 = scvt.s32.f32 %s774_s22  ;;  %v764_v25 = vadd.f32 %v763_v22, %v750_v18  ;;  %s771_s14 = scalar_lea.vmem %s1865_s27, %s2831_s16  ;;  %v1497_v37 = vpack.c.bf16 %v915_v36, %v914_v35 }
 0x141   : > { %v772_v26 = vld [vmem:[%s771_s14] sm:$0x1]  ;;  %s2697_s21 = sld [smem:[#allocation60_spill]]  ;;  %s2698_s1 = sld [smem:[#allocation61_spill]] }
 0x142   : > { %v776_v27 = vstv %s775_s6  ;;  %1498 = vmatpush3.bf16.msra.mxu1 %v1497_v37  ;;  %s1161_s13 = sshll.u32 %s2694_s25, 3  ;;  %s996_s20 = scalar_lea.sflag [#allocation7], %s2694_s25 }
 0x143   : > { %v777_v29 = vmul.f32 %v776_v27, %v772_v26  ;;  %s319_s19 = scalar_lea.vmem %s2695_s17, %s2693_s23  ;;  %s306_s2 = scalar_lea.vmem [#allocation8], %s1161_s13 }
 0x144   : > { %v1327_v38 = vld [vmem:[%s319_s19] ss:$0 sm:$0xff]  ;;  %s1009_s10 = sshll.u32 %s306_s2, 4  ;;  %s1684_s16 = smov [#allocation8]   ;;  %s2432_s10 = int_to_ptr.vmem [resolvable:$true] %s1009_s10 }
 0x145   : > { %v778_v31 = vadd.f32 %v777_v29, %v764_v25  ;;  %s1606_s3 = scalar_lea.vmem %s2432_s10, 128  ;;  %p2700_p7 = scmp.ne.s32.totalorder %s2696_s5, 0 }
 0x146   : > { %p1607_p13 = scmp.ne.s32.totalorder %s2432_s10, %s1606_s3  ;;  %s1610_s29 = sshll.u32 %s1684_s16, 4  ;;  %s1611_s29 = int_to_ptr.vmem [resolvable:$false] %s1610_s29 }
 0x147   : > { %v798_v33 = vrot.slane %v778_v31, 1  ;;  %s322_s4 = scalar_lea.vmem %s2697_s21, %s2693_s23  ;;  %s2699_s15 = smov %s2698_s1 }
 0x148   : > { %v1329_v43 = vld [vmem:[%s322_s4] ss:$0 sm:$0xff]  ;;  %s2430_s8 = scalar_lea.hbm %s2698_s1, %s1847_s28  ;;  %p1608_p2 = pnand %p1607_p13, %p2700_p7 }
 0x149   : > { %v813_v34 = vsel %vm812_vm7, %v811_v32, %v798_v33  ;;  %s1612_s9 = scalar_lea.vmem %s1611_s29, 256  ;;  %p1613_p9 = scmp.lt.s32.totalorder %s2432_s10, %s1611_s29 }
 0x14a   : > { %1432 = vmatmul.mubr.msk.f32.vlgmr.msra.gmra.mrb[0].mxu0 %vm825_vm8, %v813_v34  ;;  %p1609_p8 = pneg %p1608_p2  ;;  %p1614_p4 = scmp.lt.s32.totalorder %s1612_s9, %s1606_s3 }
 0x14c   : > { %p1615_p6 = por %p1614_p4, %p1613_p9 }
 0x14e   : > { %p1616_p10 = pnand %p1615_p6, %p1609_p8 }
 0x21d   : > { %v895_v39 = vpop.f32.mrb[0].mxu0 }
 0x21e   : > { %v896_v40 = vadd.f32 %v1327_v38, %v895_v39  ;;  %v1433_v41 = vpop.f32.mrb[1].mxu0 }
 0x220   : > { %v899_v42 = vmax.f32 %v896_v40, 0.0 }
 0x222   : > { %1467 = vmatmul.mubr.f32.vlgmr.msra.gmra.mrb[0].mxu1 %v899_v42 }
 0x2f5   : > { %v989_v44 = vpop.f32.mrb[0].mxu1 }
 0x2f6   : > { %v990_v45 = vadd.f32 %v1329_v43, %v989_v44  ;;  %v1468_v46 = vpop.f32.mrb[1].mxu1 }
 0x2f8   : > { %v993_v47 = vmax.f32 %v990_v45, 0.0 }
 0x2fa   : > { %994 = vst [vmem:[%s306_s2] sm:$0xff] %v993_v47 }
 0x2fb   : > { %1619 = shalt.err (!%p1616_p10)
}
 0x2fc   : > { %s1620_s28 = scalar_lea.hbm %s2430_s8, 128  ;;  %s1624_s22 = scalar_lea.hbm %s2699_s15, 256 }
 0x2fd   : > { %p1621_p12 = scmp.ne.s32.totalorder %s2430_s8, %s1620_s28  ;;  %p1625_p3 = scmp.lt.u32.totalorder %s2430_s8, %s2699_s15 }
 0x2fe   : > { %p1626_p5 = scmp.lt.u32.totalorder %s1624_s22, %s1620_s28  ;;  %p1628_p13 = scmp.lt.u32.totalorder %s1620_s28, %s2430_s8 }
 0x2ff   : > { %p1622_p0 = pnand %p1621_p12, %p2700_p7 }
 0x300   : > { %p1627_p11 = por %p1626_p5, %p1625_p3 }
 0x301   : > { %p1623_p1 = pneg %p1622_p0 }
 0x302   : > { %p1629_p2 = por %p1628_p13, %p1627_p11 }
 0x304   : > { %p1630_p8 = pnand %p1629_p2, %p1623_p1 }
 0x306   : > { %1633 = shalt.err (!%p1630_p8)
}
 0x307   : > { %1501 = dma.vmem_to_hbm [thread:$0]  (%p2700_p7), %s2432_s10, 128, %s2430_s8, %s996_s20  }
 0x308 PF: > { %s2701_s14 = sld [smem:[#allocation12_spill]]  ;;  %s2702_s23 = sld [smem:[#allocation19_spill]] }
 0x309   : > { %s2703_s25 = sld [smem:[#allocation15_spill]] }
 0x30e   : > { %s1021_s27 = sand.u32 1, %s2701_s14   ;;  %p2704_p9 = scmp.ne.s32.totalorder %s2702_s23, 0 }
 0x30f   : > { %p2705_p4 = scmp.ge.s32.totalorder %s2703_s25, 2  ;;  %s1022_s30 = scalar_lea.sflag [#allocation7], %s1021_s27 }
 0x311   : > { %p1508_p6 = pnand %p2705_p4, %p2704_p9 }
 0x313   : > { %1657 = dma.done.wait (!%p1508_p6), %s1022_s30, 128  }
 0x314   : > { %1659 = vsyncadd (!%p1508_p6), %s1022_s30, 4294967168  ;;  %s2706_s12 = sld [smem:[#allocation16_spill]]  ;;  %s2707_s1 = sld [smem:[#allocation13_spill]] }
 0x315   : > { %s2708_s10 = sld [smem:[#allocation14_spill]]  ;;  %s2709_s11 = sld [smem:[#allocation17_spill]] }
 0x31a   : > { %p30_p10 = scmp.ge.s32.totalorder %s2706_s12, 4  }
 0x31c   :  { %32 = sbr.rel (!%p30_p10) target bundleno = 33 (0x21), region = 129 }
 0x323   :  { %1027 = vsyncpa [#allocation6], 1 }
 0x324   :  { %1029 = vsyncpa [#allocation6 + $0x1], 1 }
 0x325   :  { %1030 = vsyncpa [#allocation7], 1 }
 0x326   :  { %1032 = vsyncpa [#allocation7 + $0x1], 1 }

</bundles_post_ra>
